<compile_context>
chip_gen: v7x
topology: tpu7x:2x2x1
jax: 0.10.0
libtpu: 0.0.40
codegen_flags: <defaults>
</compile_context>

<pallas_src>
import functools

import numpy as np
import jax
import jax.numpy as jnp
from jax.experimental import pallas as pl
from jax.experimental.pallas import tpu as pltpu


# ---------------------------------------------------------------------------
# kernels
# ---------------------------------------------------------------------------

def _holo_fused_kernel(x_ref, c_ref, s_ref, ic_ref, is_ref, o_ref, acc_ref, *,
                       pairs, correlation, cdtype):
    """Fused gather + circular convolution/correlation for one batch tile.

    x_ref  : (TB, F, D)  feature embeddings (compute dtype)
    c_ref  : (D, Kf)     cos table, Kf = D//2 + 1 (rfft symmetry)
    s_ref  : (D, Kf)     sin table
    ic_ref : (Kf, D)     w * cos / D   (inverse; weights + 1/D folded in)
    is_ref : (Kf, D)     w * sin / D
    o_ref  : (TB, P, D)  output block
    acc_ref: (TB, P, D)  f32 scratch, filled pair by pair, stored once densely.
    """
    num_fields = x_ref.shape[1]
    ctab = c_ref[...]
    stab = s_ref[...]
    ictab = ic_ref[...]
    istab = is_ref[...]

    # Forward real-DFT once per field (F matmul pairs instead of 2*P).
    fcos, fsin = [], []
    for f in range(num_fields):
        xf = x_ref[:, f, :]                                          # (TB, D)
        fcos.append(jnp.dot(xf, ctab, preferred_element_type=jnp.float32))
        fsin.append(jnp.dot(xf, stab, preferred_element_type=jnp.float32))

    # Pair products in frequency space + inverse real-DFT, pair by pair.
    for p, (r, c) in enumerate(pairs):
        ca, sa = fcos[r], fsin[r]
        cb, sb = fcos[c], fsin[c]
        if correlation:      # conj(FFT(a)) * FFT(b)
            p_re = ca * cb + sa * sb
            t = ca * sb - sa * cb
        else:                # FFT(a) * FFT(b)
            p_re = ca * cb - sa * sb
            t = ca * sb + sa * cb
        out_p = (jnp.dot(p_re.astype(cdtype), ictab,
                         preferred_element_type=jnp.float32)
                 + jnp.dot(t.astype(cdtype), istab,
                           preferred_element_type=jnp.float32))
        acc_ref[:, p, :] = out_p
    o_ref[...] = acc_ref[...].astype(o_ref.dtype)


def _holo_pairs_kernel(a_ref, b_ref, c_ref, s_ref, ic_ref, is_ref, o_ref, *,
                       correlation, cdtype):
    """Row-pairs fallback: a_ref/b_ref hold pre-gathered (TM, D) pair rows."""
    ctab = c_ref[...]
    stab = s_ref[...]
    a = a_ref[...]
    b = b_ref[...]
    ca = jnp.dot(a, ctab, preferred_element_type=jnp.float32)
    sa = jnp.dot(a, stab, preferred_element_type=jnp.float32)
    cb = jnp.dot(b, ctab, preferred_element_type=jnp.float32)
    sb = jnp.dot(b, stab, preferred_element_type=jnp.float32)
    if correlation:
        p_re = ca * cb + sa * sb
        t = ca * sb - sa * cb
    else:
        p_re = ca * cb - sa * sb
        t = ca * sb + sa * cb
    out = (jnp.dot(p_re.astype(cdtype), ic_ref[...],
                   preferred_element_type=jnp.float32)
           + jnp.dot(t.astype(cdtype), is_ref[...],
                     preferred_element_type=jnp.float32))
    o_ref[...] = out.astype(o_ref.dtype)


def _hadamard_fused_kernel(x_ref, o_ref, *, pairs):
    """Fused gather + elementwise product; per-pair rows written straight to out."""
    num_fields = x_ref.shape[1]
    fields = [x_ref[:, f, :] for f in range(num_fields)]
    for p, (r, c) in enumerate(pairs):
        o_ref[:, p, :] = fields[r] * fields[c]


def _mul_kernel(a_ref, b_ref, o_ref):
    o_ref[...] = a_ref[...] * b_ref[...]


# ---------------------------------------------------------------------------
# helpers
# ---------------------------------------------------------------------------

def _round_up(x, m):
    return (x + m - 1) // m * m


def _vmem_budget():
    """(data budget for pipelined blocks+intermediates, vmem_limit_bytes), per gen."""
    try:
        cap = int(pltpu.get_tpu_info().vmem_capacity_bytes)
    except Exception:                       # not queryable: assume smallest (v7x, 64 MiB)
        cap = 64 * 1024 * 1024
    data_budget = min(cap // 5, 24 * 1024 * 1024)   # ~24 MiB v5e/v6e, ~12 MiB v7x
    vmem_limit = min(cap // 2, 40 * 1024 * 1024)    # 40 MiB v5e/v6e, 32 MiB v7x
    return data_budget, vmem_limit


def _pick_tile(rows, per_row_bytes, budget_bytes, *, target_steps=8, align=16,
               max_tile=4096):
    """Largest multiple-of-16 tile fitting the VMEM budget while keeping ~8 grid
    steps (>= 4 per TensorCore on a 2-core chip) when there is enough work."""
    cap = max(budget_bytes, per_row_bytes * align) // max(per_row_bytes, 1)
    cap = max(align, min(max_tile, cap // align * align))
    want = max(align, _round_up(-(-rows // target_steps), align))
    return min(cap, want)


def _build_rdft_tables(d):
    """Real-DFT tables exploiting Hermitian symmetry (keep Kf = D//2+1 bins).

    forward:  re(FFT(x)) = x @ C,  im(FFT(x)) = -(x @ S)
    inverse:  real(ifft(prod)) = p_re @ (w*C^T/D) + t @ (w*S^T/D)
    where w doubles interior bins, 1/D is folded in, and t is defined so the
    conjugation sign of circular_correlation costs no extra pass.
    """
    kf = d // 2 + 1
    idx = np.outer(np.arange(d), np.arange(kf)) % d        # exact integer phases
    ang = (2.0 * np.pi / d) * idx
    cos_nk = np.cos(ang)                                   # (D, Kf)
    sin_nk = np.sin(ang)
    w = np.full((kf,), 2.0)
    w[0] = 1.0
    if d % 2 == 0:
        w[-1] = 1.0                                        # Nyquist bin
    inv_c = (w[:, None] * cos_nk.T) / d                    # (Kf, D)
    inv_s = (w[:, None] * sin_nk.T) / d                    # (Kf, D)
    return cos_nk, sin_nk, inv_c, inv_s


# ---------------------------------------------------------------------------
# layer
# ---------------------------------------------------------------------------

class HolographicInteraction:
    """JAX/Pallas port of fuxictr HolographicInteraction (forward only)."""

    def __init__(self, num_fields, interaction_type="circular_convolution",
                 compute_dtype=jnp.bfloat16, max_unrolled_pairs=128):
        self.num_fields = num_fields
        self.interaction_type = interaction_type
        self.compute_dtype = jnp.dtype(compute_dtype)
        self.max_unrolled_pairs = max_unrolled_pairs
        # torch.triu_indices(F, F, offset=1): row-major upper-triangle pairs
        r, c = np.triu_indices(num_fields, k=1)
        self.pairs = tuple(zip(r.tolist(), c.tolist()))
        self.triu_index = (jnp.asarray(r, jnp.int32), jnp.asarray(c, jnp.int32))
        self._tables = {}   # D -> (C, S, INV_C, INV_S) in compute dtype

    def _dft_tables(self, d):
        if d not in self._tables:
            self._tables[d] = tuple(
                jnp.asarray(t, self.compute_dtype) for t in _build_rdft_tables(d))
        return self._tables[d]

    # -- circular convolution / correlation: fused gather + DFT kernel ------
    def _circular_fused(self, feature_emb, correlation):
        B, F, D = feature_emb.shape
        P = len(self.pairs)
        x = feature_emb.astype(self.compute_dtype)     # cast once, BEFORE any gather
        ctab, stab, ictab, istab = self._dft_tables(D)
        kf = ctab.shape[1]
        item = self.compute_dtype.itemsize

        budget, vmem_limit = _vmem_budget()
        table_bytes = 4 * D * kf * item
        per_row = (2 * F * D * item          # input block, double buffered
                   + 2 * P * D * item        # output block, double buffered
                   + P * D * 4               # f32 output scratch
                   + 2 * F * kf * 4          # per-field f32 forward DFTs
                   + 4 * kf * 4 + 2 * D * 4)  # per-pair temporaries / headroom
        tb = _pick_tile(B, per_row, max(budget - table_bytes, 2 * 1024 * 1024))

        bp = _round_up(B, tb)
        if bp != B:
            x = jnp.pad(x, ((0, bp - B), (0, 0), (0, 0)))

        kernel = functools.partial(_holo_fused_kernel, pairs=self.pairs,
                                   correlation=correlation,
                                   cdtype=self.compute_dtype)
        vmem_spec = pl.BlockSpec(memory_space=pltpu.MemorySpace.VMEM)
        out = pl.pallas_call(
            kernel,
            out_shape=jax.ShapeDtypeStruct((bp, P, D), self.compute_dtype),
            grid_spec=pltpu.PrefetchScalarGridSpec(
                num_scalar_prefetch=0,
                grid=(bp // tb,),
                in_specs=[pl.BlockSpec((tb, F, D), lambda i: (i, 0, 0)),
                          vmem_spec, vmem_spec, vmem_spec, vmem_spec],
                out_specs=pl.BlockSpec((tb, P, D), lambda i: (i, 0, 0)),
                scratch_shapes=[pltpu.VMEM((tb, P, D), jnp.float32)]),
            compiler_params=pltpu.CompilerParams(
                dimension_semantics=("parallel",),
                vmem_limit_bytes=vmem_limit),
        )(x, ctab, stab, ictab, istab)
        return out[:B]

    # -- circular conv/corr: row-pairs fallback (very large num_fields) ------
    def _circular_pairs(self, feature_emb, correlation):
        B, F, D = feature_emb.shape
        x = feature_emb.astype(self.compute_dtype)     # cast once, before the gather
        emb1 = jnp.take(x, self.triu_index[0], axis=1)  # (B, P, D)
        emb2 = jnp.take(x, self.triu_index[1], axis=1)
        P = emb1.shape[1]
        M = B * P
        a = emb1.reshape(M, D)
        b = emb2.reshape(M, D)
        ctab, stab, ictab, istab = self._dft_tables(D)
        kf = ctab.shape[1]
        item = self.compute_dtype.itemsize

        budget, vmem_limit = _vmem_budget()
        table_bytes = 4 * D * kf * item
        per_row = (4 * D * item              # a + b blocks, double buffered
                   + 2 * D * item            # output block, double buffered
                   + 6 * kf * 4 + 2 * D * 4)  # f32 intermediates
        tm = _pick_tile(M, per_row, max(budget - table_bytes, 2 * 1024 * 1024))

        mp = _round_up(M, tm)
        if mp != M:
            a = jnp.pad(a, ((0, mp - M), (0, 0)))
            b = jnp.pad(b, ((0, mp - M), (0, 0)))

        row_spec = pl.BlockSpec((tm, D), lambda i: (i, 0))
        vmem_spec = pl.BlockSpec(memory_space=pltpu.MemorySpace.VMEM)
        kernel = functools.partial(_holo_pairs_kernel, correlation=correlation,
                                   cdtype=self.compute_dtype)
        out = pl.pallas_call(
            kernel,
            out_shape=jax.ShapeDtypeStruct((mp, D), self.compute_dtype),
            grid_spec=pltpu.PrefetchScalarGridSpec(
                num_scalar_prefetch=0,
                grid=(mp // tm,),
                in_specs=[row_spec, row_spec,
                          vmem_spec, vmem_spec, vmem_spec, vmem_spec],
                out_specs=row_spec),
            compiler_params=pltpu.CompilerParams(
                dimension_semantics=("parallel",),
                vmem_limit_bytes=vmem_limit),
        )(a, b, ctab, stab, ictab, istab)
        return out[:M].reshape(B, P, D)

    # -- hadamard product: fused gather + multiply ---------------------------
    def _hadamard_fused(self, feature_emb):
        B, F, D = feature_emb.shape
        P = len(self.pairs)
        item = feature_emb.dtype.itemsize
        budget, vmem_limit = _vmem_budget()
        per_row = 2 * F * D * item + 2 * P * D * item + F * D * item
        tb = _pick_tile(B, per_row, budget)
        bp = _round_up(B, tb)
        x = feature_emb
        if bp != B:
            x = jnp.pad(x, ((0, bp - B), (0, 0), (0, 0)))
        kernel = functools.partial(_hadamard_fused_kernel, pairs=self.pairs)
        out = pl.pallas_call(
            kernel,
            out_shape=jax.ShapeDtypeStruct((bp, P, D), feature_emb.dtype),
            grid_spec=pltpu.PrefetchScalarGridSpec(
                num_scalar_prefetch=0,
                grid=(bp // tb,),
                in_specs=[pl.BlockSpec((tb, F, D), lambda i: (i, 0, 0))],
                out_specs=pl.BlockSpec((tb, P, D), lambda i: (i, 0, 0))),
            compiler_params=pltpu.CompilerParams(
                dimension_semantics=("parallel",),
                vmem_limit_bytes=vmem_limit),
        )(x)
        return out[:B]

    # -- hadamard product: lane-dense fallback (gather in wrapper) -----------
    def _hadamard_pairs(self, feature_emb):
        B, F, D = feature_emb.shape
        emb1 = jnp.take(feature_emb, self.triu_index[0], axis=1)
        emb2 = jnp.take(feature_emb, self.triu_index[1], axis=1)
        P = emb1.shape[1]
        a = emb1.reshape(B, P * D)          # lane-dense last dim, no pad/reshape loop
        b = emb2.reshape(B, P * D)
        item = feature_emb.dtype.itemsize
        budget, vmem_limit = _vmem_budget()
        per_row = 6 * P * D * item
        tb = _pick_tile(B, per_row, budget)
        bp = _round_up(B, tb)
        if bp != B:
            a = jnp.pad(a, ((0, bp - B), (0, 0)))
            b = jnp.pad(b, ((0, bp - B), (0, 0)))
        spec = pl.BlockSpec((tb, P * D), lambda i: (i, 0))
        out = pl.pallas_call(
            _mul_kernel,
            out_shape=jax.ShapeDtypeStruct((bp, P * D), feature_emb.dtype),
            grid_spec=pltpu.PrefetchScalarGridSpec(
                num_scalar_prefetch=0, grid=(bp // tb,),
                in_specs=[spec, spec], out_specs=spec),
            compiler_params=pltpu.CompilerParams(
                dimension_semantics=("parallel",),
                vmem_limit_bytes=vmem_limit),
        )(a, b)
        return out[:B].reshape(B, P, D)

    def __call__(self, feature_emb):
        B, F, D = feature_emb.shape
        assert F == self.num_fields
        P = len(self.pairs)
        fused = P <= self.max_unrolled_pairs
        if self.interaction_type == "hadamard_product":
            return self._hadamard_fused(feature_emb) if fused \
                else self._hadamard_pairs(feature_emb)
        if self.interaction_type == "circular_convolution":
            correlation = False
        elif self.interaction_type == "circular_correlation":
            correlation = True
        else:
            raise ValueError(
                "interaction_type={} not supported.".format(self.interaction_type))
        return self._circular_fused(feature_emb, correlation) if fused \
            else self._circular_pairs(feature_emb, correlation)


# ---------------------------------------------------------------------------
# reference + test
# ---------------------------------------------------------------------------

def _reference(feature_emb, triu_index, interaction_type):
    emb1 = jnp.take(feature_emb, triu_index[0], axis=1)
    emb2 = jnp.take(feature_emb, triu_index[1], axis=1)
    if interaction_type == "hadamard_product":
        return emb1 * emb2
    f1 = jnp.fft.fft(emb1, axis=-1)
    f2 = jnp.fft.fft(emb2, axis=-1)
    if interaction_type == "circular_correlation":
        f1 = jnp.conj(f1)
    return jnp.real(jnp.fft.ifft(f1 * f2, axis=-1)).astype(jnp.float32)


if __name__ == "__main__":
    ok = True
    for (B, F, D) in ((4, 5, 32), (2, 4, 64)):
        key = jax.random.PRNGKey(0)
        feature_emb = jax.random.normal(key, (B, F, D), dtype=jnp.float32)
        P = F * (F - 1) // 2
        for itype in ("circular_convolution", "circular_correlation",
                      "hadamard_product"):
            # (compute_dtype, rel-tolerance, max_unrolled_pairs override)
            if itype == "hadamard_product":
                cfgs = [(jnp.float32, 1e-5, None),     # fused path (exact)
                        (jnp.float32, 1e-5, 0)]        # fallback path (exact)
            else:
                cfgs = [(jnp.float32, 2e-2, None),     # fused, f32 compute
                        (jnp.bfloat16, 5e-2, None),    # fused, bf16 compute
                        (jnp.bfloat16, 5e-2, 0)]       # fallback, bf16 compute
            for cdtype, tol, max_pairs in cfgs:
                kwargs = {} if max_pairs is None else {"max_unrolled_pairs": max_pairs}
                layer = HolographicInteraction(
                    num_fields=F, interaction_type=itype,
                    compute_dtype=cdtype, **kwargs)
                out = jax.block_until_ready(layer(feature_emb))
                ref = _reference(feature_emb, layer.triu_index, itype)
                if out.shape != (B, P, D):
                    ok = False
                    continue
                out32 = out.astype(jnp.float32)
                rel = jnp.linalg.norm(out32 - ref) / (jnp.linalg.norm(ref) + 1e-12)
                if not bool(rel < tol):
                    ok = False

    print("KERNEL_OK" if ok else "KERNEL_MISMATCH")
</pallas_src>

<mosaic_0001>
module attributes {stable_mosaic.version = 11 : i64} {
  func.func @_holo_fused_kernel(%arg0: i32, %arg1: memref<16x5x32xf32, #tpu.memory_space<vmem>>, %arg2: memref<32x17xf32, #tpu.memory_space<vmem>>, %arg3: memref<32x17xf32, #tpu.memory_space<vmem>>, %arg4: memref<17x32xf32, #tpu.memory_space<vmem>>, %arg5: memref<17x32xf32, #tpu.memory_space<vmem>>, %arg6: memref<16x10x32xf32, #tpu.memory_space<vmem>>, %arg7: memref<16x10x32xf32, #tpu.memory_space<vmem>>) attributes {dimension_semantics = [#tpu.dimension_semantics<parallel>], iteration_bounds = array<i64: 1>, scalar_prefetch = 0 : i64, scratch_operands = 1 : i64, tpu.core_type = #tpu.core_type<tc>, window_params = [{transform_indices = @transform_0, window_bounds = array<i64: 16, 5, 32>}, {pipeline_mode = #tpu.pipeline_mode<synchronous>, transform_indices = @transform_1, window_bounds = array<i64: 32, 17>}, {pipeline_mode = #tpu.pipeline_mode<synchronous>, transform_indices = @transform_2, window_bounds = array<i64: 32, 17>}, {pipeline_mode = #tpu.pipeline_mode<synchronous>, transform_indices = @transform_3, window_bounds = array<i64: 17, 32>}, {pipeline_mode = #tpu.pipeline_mode<synchronous>, transform_indices = @transform_4, window_bounds = array<i64: 17, 32>}, {transform_indices = @transform_5, window_bounds = array<i64: 16, 10, 32>}]} {
    %c0 = arith.constant 0 : index
    %c0_0 = arith.constant 0 : index
    %0 = vector.load %arg2[%c0, %c0_0] : memref<32x17xf32, #tpu.memory_space<vmem>>, vector<32x17xf32>
    %c0_1 = arith.constant 0 : index
    %c0_2 = arith.constant 0 : index
    %1 = vector.load %arg3[%c0_1, %c0_2] : memref<32x17xf32, #tpu.memory_space<vmem>>, vector<32x17xf32>
    %c0_3 = arith.constant 0 : index
    %c0_4 = arith.constant 0 : index
    %2 = vector.load %arg4[%c0_3, %c0_4] : memref<17x32xf32, #tpu.memory_space<vmem>>, vector<17x32xf32>
    %c0_5 = arith.constant 0 : index
    %c0_6 = arith.constant 0 : index
    %3 = vector.load %arg5[%c0_5, %c0_6] : memref<17x32xf32, #tpu.memory_space<vmem>>, vector<17x32xf32>
    %c0_7 = arith.constant 0 : index
    %c0_8 = arith.constant 0 : index
    %c0_9 = arith.constant 0 : index
    %4 = vector.load %arg1[%c0_7, %c0_8, %c0_9] : memref<16x5x32xf32, #tpu.memory_space<vmem>>, vector<16x1x32xf32>
    %5 = vector.shape_cast %4 : vector<16x1x32xf32> to vector<16x32xf32>
    %cst = arith.constant dense<0.000000e+00> : vector<16x17xf32>
    %6 = tpu.matmul %5, %0, %cst {dimension_numbers = #tpu.dot_dimension_numbers<[1], [0], [0], [1], [0, 0, 1, 1], [], []>} : vector<16x32xf32>, vector<32x17xf32>, vector<16x17xf32> -> vector<16x17xf32>
    %cst_10 = arith.constant dense<0.000000e+00> : vector<16x17xf32>
    %7 = tpu.matmul %5, %1, %cst_10 {dimension_numbers = #tpu.dot_dimension_numbers<[1], [0], [0], [1], [0, 0, 1, 1], [], []>} : vector<16x32xf32>, vector<32x17xf32>, vector<16x17xf32> -> vector<16x17xf32>
    %c0_11 = arith.constant 0 : index
    %c1 = arith.constant 1 : index
    %c0_12 = arith.constant 0 : index
    %8 = vector.load %arg1[%c0_11, %c1, %c0_12] : memref<16x5x32xf32, #tpu.memory_space<vmem>>, vector<16x1x32xf32>
    %9 = vector.shape_cast %8 : vector<16x1x32xf32> to vector<16x32xf32>
    %cst_13 = arith.constant dense<0.000000e+00> : vector<16x17xf32>
    %10 = tpu.matmul %9, %0, %cst_13 {dimension_numbers = #tpu.dot_dimension_numbers<[1], [0], [0], [1], [0, 0, 1, 1], [], []>} : vector<16x32xf32>, vector<32x17xf32>, vector<16x17xf32> -> vector<16x17xf32>
    %cst_14 = arith.constant dense<0.000000e+00> : vector<16x17xf32>
    %11 = tpu.matmul %9, %1, %cst_14 {dimension_numbers = #tpu.dot_dimension_numbers<[1], [0], [0], [1], [0, 0, 1, 1], [], []>} : vector<16x32xf32>, vector<32x17xf32>, vector<16x17xf32> -> vector<16x17xf32>
    %c0_15 = arith.constant 0 : index
    %c2 = arith.constant 2 : index
    %c0_16 = arith.constant 0 : index
    %12 = vector.load %arg1[%c0_15, %c2, %c0_16] : memref<16x5x32xf32, #tpu.memory_space<vmem>>, vector<16x1x32xf32>
    %13 = vector.shape_cast %12 : vector<16x1x32xf32> to vector<16x32xf32>
    %cst_17 = arith.constant dense<0.000000e+00> : vector<16x17xf32>
    %14 = tpu.matmul %13, %0, %cst_17 {dimension_numbers = #tpu.dot_dimension_numbers<[1], [0], [0], [1], [0, 0, 1, 1], [], []>} : vector<16x32xf32>, vector<32x17xf32>, vector<16x17xf32> -> vector<16x17xf32>
    %cst_18 = arith.constant dense<0.000000e+00> : vector<16x17xf32>
    %15 = tpu.matmul %13, %1, %cst_18 {dimension_numbers = #tpu.dot_dimension_numbers<[1], [0], [0], [1], [0, 0, 1, 1], [], []>} : vector<16x32xf32>, vector<32x17xf32>, vector<16x17xf32> -> vector<16x17xf32>
    %c0_19 = arith.constant 0 : index
    %c3 = arith.constant 3 : index
    %c0_20 = arith.constant 0 : index
    %16 = vector.load %arg1[%c0_19, %c3, %c0_20] : memref<16x5x32xf32, #tpu.memory_space<vmem>>, vector<16x1x32xf32>
    %17 = vector.shape_cast %16 : vector<16x1x32xf32> to vector<16x32xf32>
    %cst_21 = arith.constant dense<0.000000e+00> : vector<16x17xf32>
    %18 = tpu.matmul %17, %0, %cst_21 {dimension_numbers = #tpu.dot_dimension_numbers<[1], [0], [0], [1], [0, 0, 1, 1], [], []>} : vector<16x32xf32>, vector<32x17xf32>, vector<16x17xf32> -> vector<16x17xf32>
    %cst_22 = arith.constant dense<0.000000e+00> : vector<16x17xf32>
    %19 = tpu.matmul %17, %1, %cst_22 {dimension_numbers = #tpu.dot_dimension_numbers<[1], [0], [0], [1], [0, 0, 1, 1], [], []>} : vector<16x32xf32>, vector<32x17xf32>, vector<16x17xf32> -> vector<16x17xf32>
    %c0_23 = arith.constant 0 : index
    %c4 = arith.constant 4 : index
    %c0_24 = arith.constant 0 : index
    %20 = vector.load %arg1[%c0_23, %c4, %c0_24] : memref<16x5x32xf32, #tpu.memory_space<vmem>>, vector<16x1x32xf32>
    %21 = vector.shape_cast %20 : vector<16x1x32xf32> to vector<16x32xf32>
    %cst_25 = arith.constant dense<0.000000e+00> : vector<16x17xf32>
    %22 = tpu.matmul %21, %0, %cst_25 {dimension_numbers = #tpu.dot_dimension_numbers<[1], [0], [0], [1], [0, 0, 1, 1], [], []>} : vector<16x32xf32>, vector<32x17xf32>, vector<16x17xf32> -> vector<16x17xf32>
    %cst_26 = arith.constant dense<0.000000e+00> : vector<16x17xf32>
    %23 = tpu.matmul %21, %1, %cst_26 {dimension_numbers = #tpu.dot_dimension_numbers<[1], [0], [0], [1], [0, 0, 1, 1], [], []>} : vector<16x32xf32>, vector<32x17xf32>, vector<16x17xf32> -> vector<16x17xf32>
    %24 = arith.mulf %6, %10 : vector<16x17xf32>
    %25 = arith.mulf %7, %11 : vector<16x17xf32>
    %26 = arith.subf %24, %25 : vector<16x17xf32>
    %27 = arith.mulf %6, %11 : vector<16x17xf32>
    %28 = arith.mulf %7, %10 : vector<16x17xf32>
    %29 = arith.addf %27, %28 : vector<16x17xf32>
    %cst_27 = arith.constant dense<0.000000e+00> : vector<16x32xf32>
    %30 = tpu.matmul %26, %2, %cst_27 {dimension_numbers = #tpu.dot_dimension_numbers<[1], [0], [0], [1], [0, 0, 1, 1], [], []>} : vector<16x17xf32>, vector<17x32xf32>, vector<16x32xf32> -> vector<16x32xf32>
    %cst_28 = arith.constant dense<0.000000e+00> : vector<16x32xf32>
    %31 = tpu.matmul %29, %3, %cst_28 {dimension_numbers = #tpu.dot_dimension_numbers<[1], [0], [0], [1], [0, 0, 1, 1], [], []>} : vector<16x17xf32>, vector<17x32xf32>, vector<16x32xf32> -> vector<16x32xf32>
    %32 = arith.addf %30, %31 : vector<16x32xf32>
    %c0_29 = arith.constant 0 : index
    %c0_30 = arith.constant 0 : index
    %c0_31 = arith.constant 0 : index
    %33 = vector.load %arg7[%c0_29, %c0_30, %c0_31] : memref<16x10x32xf32, #tpu.memory_space<vmem>>, vector<16x1x32xf32>
    %34 = vector.shape_cast %33 : vector<16x1x32xf32> to vector<16x32xf32>
    %35 = vector.shape_cast %32 : vector<16x32xf32> to vector<16x1x32xf32>
    tpu.vector_store %arg7[%c0_29, %c0_30, %c0_31], %35 {strides = array<i32>} : memref<16x10x32xf32, #tpu.memory_space<vmem>>, vector<16x1x32xf32>,
    %36 = arith.mulf %6, %14 : vector<16x17xf32>
    %37 = arith.mulf %7, %15 : vector<16x17xf32>
    %38 = arith.subf %36, %37 : vector<16x17xf32>
    %39 = arith.mulf %6, %15 : vector<16x17xf32>
    %40 = arith.mulf %7, %14 : vector<16x17xf32>
    %41 = arith.addf %39, %40 : vector<16x17xf32>
    %cst_32 = arith.constant dense<0.000000e+00> : vector<16x32xf32>
    %42 = tpu.matmul %38, %2, %cst_32 {dimension_numbers = #tpu.dot_dimension_numbers<[1], [0], [0], [1], [0, 0, 1, 1], [], []>} : vector<16x17xf32>, vector<17x32xf32>, vector<16x32xf32> -> vector<16x32xf32>
    %cst_33 = arith.constant dense<0.000000e+00> : vector<16x32xf32>
    %43 = tpu.matmul %41, %3, %cst_33 {dimension_numbers = #tpu.dot_dimension_numbers<[1], [0], [0], [1], [0, 0, 1, 1], [], []>} : vector<16x17xf32>, vector<17x32xf32>, vector<16x32xf32> -> vector<16x32xf32>
    %44 = arith.addf %42, %43 : vector<16x32xf32>
    %c0_34 = arith.constant 0 : index
    %c1_35 = arith.constant 1 : index
    %c0_36 = arith.constant 0 : index
    %45 = vector.load %arg7[%c0_34, %c1_35, %c0_36] : memref<16x10x32xf32, #tpu.memory_space<vmem>>, vector<16x1x32xf32>
    %46 = vector.shape_cast %45 : vector<16x1x32xf32> to vector<16x32xf32>
    %47 = vector.shape_cast %44 : vector<16x32xf32> to vector<16x1x32xf32>
    tpu.vector_store %arg7[%c0_34, %c1_35, %c0_36], %47 {strides = array<i32>} : memref<16x10x32xf32, #tpu.memory_space<vmem>>, vector<16x1x32xf32>,
    %48 = arith.mulf %6, %18 : vector<16x17xf32>
    %49 = arith.mulf %7, %19 : vector<16x17xf32>
    %50 = arith.subf %48, %49 : vector<16x17xf32>
    %51 = arith.mulf %6, %19 : vector<16x17xf32>
    %52 = arith.mulf %7, %18 : vector<16x17xf32>
    %53 = arith.addf %51, %52 : vector<16x17xf32>
    %cst_37 = arith.constant dense<0.000000e+00> : vector<16x32xf32>
    %54 = tpu.matmul %50, %2, %cst_37 {dimension_numbers = #tpu.dot_dimension_numbers<[1], [0], [0], [1], [0, 0, 1, 1], [], []>} : vector<16x17xf32>, vector<17x32xf32>, vector<16x32xf32> -> vector<16x32xf32>
    %cst_38 = arith.constant dense<0.000000e+00> : vector<16x32xf32>
    %55 = tpu.matmul %53, %3, %cst_38 {dimension_numbers = #tpu.dot_dimension_numbers<[1], [0], [0], [1], [0, 0, 1, 1], [], []>} : vector<16x17xf32>, vector<17x32xf32>, vector<16x32xf32> -> vector<16x32xf32>
    %56 = arith.addf %54, %55 : vector<16x32xf32>
    %c0_39 = arith.constant 0 : index
    %c2_40 = arith.constant 2 : index
    %c0_41 = arith.constant 0 : index
    %57 = vector.load %arg7[%c0_39, %c2_40, %c0_41] : memref<16x10x32xf32, #tpu.memory_space<vmem>>, vector<16x1x32xf32>
    %58 = vector.shape_cast %57 : vector<16x1x32xf32> to vector<16x32xf32>
    %59 = vector.shape_cast %56 : vector<16x32xf32> to vector<16x1x32xf32>
    tpu.vector_store %arg7[%c0_39, %c2_40, %c0_41], %59 {strides = array<i32>} : memref<16x10x32xf32, #tpu.memory_space<vmem>>, vector<16x1x32xf32>,
    %60 = arith.mulf %6, %22 : vector<16x17xf32>
    %61 = arith.mulf %7, %23 : vector<16x17xf32>
    %62 = arith.subf %60, %61 : vector<16x17xf32>
    %63 = arith.mulf %6, %23 : vector<16x17xf32>
    %64 = arith.mulf %7, %22 : vector<16x17xf32>
    %65 = arith.addf %63, %64 : vector<16x17xf32>
    %cst_42 = arith.constant dense<0.000000e+00> : vector<16x32xf32>
    %66 = tpu.matmul %62, %2, %cst_42 {dimension_numbers = #tpu.dot_dimension_numbers<[1], [0], [0], [1], [0, 0, 1, 1], [], []>} : vector<16x17xf32>, vector<17x32xf32>, vector<16x32xf32> -> vector<16x32xf32>
    %cst_43 = arith.constant dense<0.000000e+00> : vector<16x32xf32>
    %67 = tpu.matmul %65, %3, %cst_43 {dimension_numbers = #tpu.dot_dimension_numbers<[1], [0], [0], [1], [0, 0, 1, 1], [], []>} : vector<16x17xf32>, vector<17x32xf32>, vector<16x32xf32> -> vector<16x32xf32>
    %68 = arith.addf %66, %67 : vector<16x32xf32>
    %c0_44 = arith.constant 0 : index
    %c3_45 = arith.constant 3 : index
    %c0_46 = arith.constant 0 : index
    %69 = vector.load %arg7[%c0_44, %c3_45, %c0_46] : memref<16x10x32xf32, #tpu.memory_space<vmem>>, vector<16x1x32xf32>
    %70 = vector.shape_cast %69 : vector<16x1x32xf32> to vector<16x32xf32>
    %71 = vector.shape_cast %68 : vector<16x32xf32> to vector<16x1x32xf32>
    tpu.vector_store %arg7[%c0_44, %c3_45, %c0_46], %71 {strides = array<i32>} : memref<16x10x32xf32, #tpu.memory_space<vmem>>, vector<16x1x32xf32>,
    %72 = arith.mulf %10, %14 : vector<16x17xf32>
    %73 = arith.mulf %11, %15 : vector<16x17xf32>
    %74 = arith.subf %72, %73 : vector<16x17xf32>
    %75 = arith.mulf %10, %15 : vector<16x17xf32>
    %76 = arith.mulf %11, %14 : vector<16x17xf32>
    %77 = arith.addf %75, %76 : vector<16x17xf32>
    %cst_47 = arith.constant dense<0.000000e+00> : vector<16x32xf32>
    %78 = tpu.matmul %74, %2, %cst_47 {dimension_numbers = #tpu.dot_dimension_numbers<[1], [0], [0], [1], [0, 0, 1, 1], [], []>} : vector<16x17xf32>, vector<17x32xf32>, vector<16x32xf32> -> vector<16x32xf32>
    %cst_48 = arith.constant dense<0.000000e+00> : vector<16x32xf32>
    %79 = tpu.matmul %77, %3, %cst_48 {dimension_numbers = #tpu.dot_dimension_numbers<[1], [0], [0], [1], [0, 0, 1, 1], [], []>} : vector<16x17xf32>, vector<17x32xf32>, vector<16x32xf32> -> vector<16x32xf32>
    %80 = arith.addf %78, %79 : vector<16x32xf32>
    %c0_49 = arith.constant 0 : index
    %c4_50 = arith.constant 4 : index
    %c0_51 = arith.constant 0 : index
    %81 = vector.load %arg7[%c0_49, %c4_50, %c0_51] : memref<16x10x32xf32, #tpu.memory_space<vmem>>, vector<16x1x32xf32>
    %82 = vector.shape_cast %81 : vector<16x1x32xf32> to vector<16x32xf32>
    %83 = vector.shape_cast %80 : vector<16x32xf32> to vector<16x1x32xf32>
    tpu.vector_store %arg7[%c0_49, %c4_50, %c0_51], %83 {strides = array<i32>} : memref<16x10x32xf32, #tpu.memory_space<vmem>>, vector<16x1x32xf32>,
    %84 = arith.mulf %10, %18 : vector<16x17xf32>
    %85 = arith.mulf %11, %19 : vector<16x17xf32>
    %86 = arith.subf %84, %85 : vector<16x17xf32>
    %87 = arith.mulf %10, %19 : vector<16x17xf32>
    %88 = arith.mulf %11, %18 : vector<16x17xf32>
    %89 = arith.addf %87, %88 : vector<16x17xf32>
    %cst_52 = arith.constant dense<0.000000e+00> : vector<16x32xf32>
    %90 = tpu.matmul %86, %2, %cst_52 {dimension_numbers = #tpu.dot_dimension_numbers<[1], [0], [0], [1], [0, 0, 1, 1], [], []>} : vector<16x17xf32>, vector<17x32xf32>, vector<16x32xf32> -> vector<16x32xf32>
    %cst_53 = arith.constant dense<0.000000e+00> : vector<16x32xf32>
    %91 = tpu.matmul %89, %3, %cst_53 {dimension_numbers = #tpu.dot_dimension_numbers<[1], [0], [0], [1], [0, 0, 1, 1], [], []>} : vector<16x17xf32>, vector<17x32xf32>, vector<16x32xf32> -> vector<16x32xf32>
    %92 = arith.addf %90, %91 : vector<16x32xf32>
    %c0_54 = arith.constant 0 : index
    %c5 = arith.constant 5 : index
    %c0_55 = arith.constant 0 : index
    %93 = vector.load %arg7[%c0_54, %c5, %c0_55] : memref<16x10x32xf32, #tpu.memory_space<vmem>>, vector<16x1x32xf32>
    %94 = vector.shape_cast %93 : vector<16x1x32xf32> to vector<16x32xf32>
    %95 = vector.shape_cast %92 : vector<16x32xf32> to vector<16x1x32xf32>
    tpu.vector_store %arg7[%c0_54, %c5, %c0_55], %95 {strides = array<i32>} : memref<16x10x32xf32, #tpu.memory_space<vmem>>, vector<16x1x32xf32>,
    %96 = arith.mulf %10, %22 : vector<16x17xf32>
    %97 = arith.mulf %11, %23 : vector<16x17xf32>
    %98 = arith.subf %96, %97 : vector<16x17xf32>
    %99 = arith.mulf %10, %23 : vector<16x17xf32>
    %100 = arith.mulf %11, %22 : vector<16x17xf32>
    %101 = arith.addf %99, %100 : vector<16x17xf32>
    %cst_56 = arith.constant dense<0.000000e+00> : vector<16x32xf32>
    %102 = tpu.matmul %98, %2, %cst_56 {dimension_numbers = #tpu.dot_dimension_numbers<[1], [0], [0], [1], [0, 0, 1, 1], [], []>} : vector<16x17xf32>, vector<17x32xf32>, vector<16x32xf32> -> vector<16x32xf32>
    %cst_57 = arith.constant dense<0.000000e+00> : vector<16x32xf32>
    %103 = tpu.matmul %101, %3, %cst_57 {dimension_numbers = #tpu.dot_dimension_numbers<[1], [0], [0], [1], [0, 0, 1, 1], [], []>} : vector<16x17xf32>, vector<17x32xf32>, vector<16x32xf32> -> vector<16x32xf32>
    %104 = arith.addf %102, %103 : vector<16x32xf32>
    %c0_58 = arith.constant 0 : index
    %c6 = arith.constant 6 : index
    %c0_59 = arith.constant 0 : index
    %105 = vector.load %arg7[%c0_58, %c6, %c0_59] : memref<16x10x32xf32, #tpu.memory_space<vmem>>, vector<16x1x32xf32>
    %106 = vector.shape_cast %105 : vector<16x1x32xf32> to vector<16x32xf32>
    %107 = vector.shape_cast %104 : vector<16x32xf32> to vector<16x1x32xf32>
    tpu.vector_store %arg7[%c0_58, %c6, %c0_59], %107 {strides = array<i32>} : memref<16x10x32xf32, #tpu.memory_space<vmem>>, vector<16x1x32xf32>,
    %108 = arith.mulf %14, %18 : vector<16x17xf32>
    %109 = arith.mulf %15, %19 : vector<16x17xf32>
    %110 = arith.subf %108, %109 : vector<16x17xf32>
    %111 = arith.mulf %14, %19 : vector<16x17xf32>
    %112 = arith.mulf %15, %18 : vector<16x17xf32>
    %113 = arith.addf %111, %112 : vector<16x17xf32>
    %cst_60 = arith.constant dense<0.000000e+00> : vector<16x32xf32>
    %114 = tpu.matmul %110, %2, %cst_60 {dimension_numbers = #tpu.dot_dimension_numbers<[1], [0], [0], [1], [0, 0, 1, 1], [], []>} : vector<16x17xf32>, vector<17x32xf32>, vector<16x32xf32> -> vector<16x32xf32>
    %cst_61 = arith.constant dense<0.000000e+00> : vector<16x32xf32>
    %115 = tpu.matmul %113, %3, %cst_61 {dimension_numbers = #tpu.dot_dimension_numbers<[1], [0], [0], [1], [0, 0, 1, 1], [], []>} : vector<16x17xf32>, vector<17x32xf32>, vector<16x32xf32> -> vector<16x32xf32>
    %116 = arith.addf %114, %115 : vector<16x32xf32>
    %c0_62 = arith.constant 0 : index
    %c7 = arith.constant 7 : index
    %c0_63 = arith.constant 0 : index
    %117 = vector.load %arg7[%c0_62, %c7, %c0_63] : memref<16x10x32xf32, #tpu.memory_space<vmem>>, vector<16x1x32xf32>
    %118 = vector.shape_cast %117 : vector<16x1x32xf32> to vector<16x32xf32>
    %119 = vector.shape_cast %116 : vector<16x32xf32> to vector<16x1x32xf32>
    tpu.vector_store %arg7[%c0_62, %c7, %c0_63], %119 {strides = array<i32>} : memref<16x10x32xf32, #tpu.memory_space<vmem>>, vector<16x1x32xf32>,
    %120 = arith.mulf %14, %22 : vector<16x17xf32>
    %121 = arith.mulf %15, %23 : vector<16x17xf32>
    %122 = arith.subf %120, %121 : vector<16x17xf32>
    %123 = arith.mulf %14, %23 : vector<16x17xf32>
    %124 = arith.mulf %15, %22 : vector<16x17xf32>
    %125 = arith.addf %123, %124 : vector<16x17xf32>
    %cst_64 = arith.constant dense<0.000000e+00> : vector<16x32xf32>
    %126 = tpu.matmul %122, %2, %cst_64 {dimension_numbers = #tpu.dot_dimension_numbers<[1], [0], [0], [1], [0, 0, 1, 1], [], []>} : vector<16x17xf32>, vector<17x32xf32>, vector<16x32xf32> -> vector<16x32xf32>
    %cst_65 = arith.constant dense<0.000000e+00> : vector<16x32xf32>
    %127 = tpu.matmul %125, %3, %cst_65 {dimension_numbers = #tpu.dot_dimension_numbers<[1], [0], [0], [1], [0, 0, 1, 1], [], []>} : vector<16x17xf32>, vector<17x32xf32>, vector<16x32xf32> -> vector<16x32xf32>
    %128 = arith.addf %126, %127 : vector<16x32xf32>
    %c0_66 = arith.constant 0 : index
    %c8 = arith.constant 8 : index
    %c0_67 = arith.constant 0 : index
    %129 = vector.load %arg7[%c0_66, %c8, %c0_67] : memref<16x10x32xf32, #tpu.memory_space<vmem>>, vector<16x1x32xf32>
    %130 = vector.shape_cast %129 : vector<16x1x32xf32> to vector<16x32xf32>
    %131 = vector.shape_cast %128 : vector<16x32xf32> to vector<16x1x32xf32>
    tpu.vector_store %arg7[%c0_66, %c8, %c0_67], %131 {strides = array<i32>} : memref<16x10x32xf32, #tpu.memory_space<vmem>>, vector<16x1x32xf32>,
    %132 = arith.mulf %18, %22 : vector<16x17xf32>
    %133 = arith.mulf %19, %23 : vector<16x17xf32>
    %134 = arith.subf %132, %133 : vector<16x17xf32>
    %135 = arith.mulf %18, %23 : vector<16x17xf32>
    %136 = arith.mulf %19, %22 : vector<16x17xf32>
    %137 = arith.addf %135, %136 : vector<16x17xf32>
    %cst_68 = arith.constant dense<0.000000e+00> : vector<16x32xf32>
    %138 = tpu.matmul %134, %2, %cst_68 {dimension_numbers = #tpu.dot_dimension_numbers<[1], [0], [0], [1], [0, 0, 1, 1], [], []>} : vector<16x17xf32>, vector<17x32xf32>, vector<16x32xf32> -> vector<16x32xf32>
    %cst_69 = arith.constant dense<0.000000e+00> : vector<16x32xf32>
    %139 = tpu.matmul %137, %3, %cst_69 {dimension_numbers = #tpu.dot_dimension_numbers<[1], [0], [0], [1], [0, 0, 1, 1], [], []>} : vector<16x17xf32>, vector<17x32xf32>, vector<16x32xf32> -> vector<16x32xf32>
    %140 = arith.addf %138, %139 : vector<16x32xf32>
    %c0_70 = arith.constant 0 : index
    %c9 = arith.constant 9 : index
    %c0_71 = arith.constant 0 : index
    %141 = vector.load %arg7[%c0_70, %c9, %c0_71] : memref<16x10x32xf32, #tpu.memory_space<vmem>>, vector<16x1x32xf32>
    %142 = vector.shape_cast %141 : vector<16x1x32xf32> to vector<16x32xf32>
    %143 = vector.shape_cast %140 : vector<16x32xf32> to vector<16x1x32xf32>
    tpu.vector_store %arg7[%c0_70, %c9, %c0_71], %143 {strides = array<i32>} : memref<16x10x32xf32, #tpu.memory_space<vmem>>, vector<16x1x32xf32>,
    %c0_72 = arith.constant 0 : index
    %c0_73 = arith.constant 0 : index
    %c0_74 = arith.constant 0 : index
    %144 = vector.load %arg7[%c0_72, %c0_73, %c0_74] : memref<16x10x32xf32, #tpu.memory_space<vmem>>, vector<16x10x32xf32>
    %c0_75 = arith.constant 0 : index
    %c0_76 = arith.constant 0 : index
    %c0_77 = arith.constant 0 : index
    %145 = vector.load %arg6[%c0_75, %c0_76, %c0_77] : memref<16x10x32xf32, #tpu.memory_space<vmem>>, vector<16x10x32xf32>
    tpu.vector_store %arg6[%c0_75, %c0_76, %c0_77], %144 {strides = array<i32>} : memref<16x10x32xf32, #tpu.memory_space<vmem>>, vector<16x10x32xf32>,
    return
  }
  func.func @transform_0(%arg0: i32) -> (i32, i32, i32) {
    %c0_i32 = arith.constant 0 : i32
    %c0_i32_0 = arith.constant 0 : i32
    %c0_i32_1 = arith.constant 0 : i32
    return %arg0, %c0_i32, %c0_i32_0 : i32, i32, i32
  }
  func.func @transform_1(%arg0: i32) -> (i32, i32) {
    %c0_i32 = arith.constant 0 : i32
    %c0_i32_0 = arith.constant 0 : i32
    %c0_i32_1 = arith.constant 0 : i32
    return %c0_i32, %c0_i32_0 : i32, i32
  }
  func.func @transform_2(%arg0: i32) -> (i32, i32) {
    %c0_i32 = arith.constant 0 : i32
    %c0_i32_0 = arith.constant 0 : i32
    %c0_i32_1 = arith.constant 0 : i32
    return %c0_i32, %c0_i32_0 : i32, i32
  }
  func.func @transform_3(%arg0: i32) -> (i32, i32) {
    %c0_i32 = arith.constant 0 : i32
    %c0_i32_0 = arith.constant 0 : i32
    %c0_i32_1 = arith.constant 0 : i32
    return %c0_i32, %c0_i32_0 : i32, i32
  }
  func.func @transform_4(%arg0: i32) -> (i32, i32) {
    %c0_i32 = arith.constant 0 : i32
    %c0_i32_0 = arith.constant 0 : i32
    %c0_i32_1 = arith.constant 0 : i32
    return %c0_i32, %c0_i32_0 : i32, i32
  }
  func.func @transform_5(%arg0: i32) -> (i32, i32, i32) {
    %c0_i32 = arith.constant 0 : i32
    %c0_i32_0 = arith.constant 0 : i32
    %c0_i32_1 = arith.constant 0 : i32
    return %arg0, %c0_i32, %c0_i32_0 : i32, i32, i32
  }
}

</mosaic_0001>

<bundles_post_ra>
// kernel: tpu_custom_call.1
= control target key start
LH: loop header
LB: loop body
LE: loop exit
PB: predicated region body
PF: predicated region fallthrough
CT: control target
= control target key end

     0   :  { %vm67_vm0 = vcmask 1041409   ;;  %vm70_vm1 = vcmask 1042434   ;;  %vm73_vm2 = vcmask 1043459   ;;  %vm76_vm3 = vcmask 1044484   ;;  %s6316_s1 = inlined_call_operand.vmem [shape: f32[32,17], index: 1, kind: input, shape index: {}]   ;;  %s6317_s2 = inlined_call_operand.vmem [shape: f32[32,17], index: 2, kind: input, shape index: {}]   ;;  %s6318_s0 = inlined_call_operand.vmem [shape: f32[16,5,32], index: 0, kind: input, shape index: {}]   ;;  %s6319_s4 = inlined_call_operand.vmem [shape: f32[17,32], index: 4, kind: input, shape index: {}]   ;;  %s6320_s3 = inlined_call_operand.vmem [shape: f32[17,32], index: 3, kind: input, shape index: {}]   ;;  %s6321_s5 = inlined_call_operand.vmem [shape: f32[16,10,32], index: 5, kind: output, shape index: {}]  }
   0x1   :  { %v20_v0 = vld [vmem:[%s6316_s1] sm:$0xff]  ;;  %v21_v1 = vld [vmem:[%s6316_s1 + $0x8] sm:$0xff]  ;;  %v22_v5 = vld [vmem:[%s6316_s1 + $0x10] sm:$0xff]  ;;  %vm79_vm4 = vcmask 1045509   ;;  %vm82_vm5 = vcmask 1046534   ;;  %vm85_vm6 = vcmask 1047559  }
   0x2   :  { %v24_v2 = vld [vmem:[%s6317_s2] sm:$0xff]  ;;  %v5001_v3 = vpack.c.bf16 %v21_v1, %v20_v0  ;;  %v25_v4 = vld [vmem:[%s6317_s2 + $0x8] sm:$0xff]  ;;  %v23_v6 = vld [vmem:[%s6316_s1 + $0x18] sm:$0xff]  ;;  %vm101_vm7 = vcmask 261120   ;;  %vm1131_vm8 = vcmask 1040384   ;;  %vm1124_vm9 = vcmask 138240  }
   0x3   :  { %v5012_v7 = vpack.c.bf16 %v25_v4, %v24_v2  ;;  %v5014_v8 = vpack.c.bf16 %v23_v6, %v22_v5  ;;  %v26_v9 = vld [vmem:[%s6317_s2 + $0x10] sm:$0xff]  ;;  %v27_v10 = vld [vmem:[%s6317_s2 + $0x18] sm:$0xff]  ;;  %v34_v11 = vld [vmem:[%s6318_s0] sm:$0x1]  ;;  %vm1410_vm10 = vcmask 253952   ;;  %vm4214_vm11 = vcmask 254976  }
   0x4   :  { %4781 = vmatprep.subr.bf16.mxu0 %v5001_v3  ;;  %v5026_v12 = vpack.c.bf16 %v27_v10, %v26_v9  ;;  %v35_v13 = vld [vmem:[%s6318_s0 + $0x8] sm:$0x1]  ;;  %v36_v14 = vld [vmem:[%s6318_s0 + $0x10] sm:$0x1]  ;;  %v37_v15 = vld [vmem:[%s6318_s0 + $0x18] sm:$0x1] }
   0x5   :  { %4789 = vmatprep.subr.bf16.mxu1 %v5012_v7  ;;  %4783 = vmatpush3.bf16.msra.mxu0 %v5001_v3  ;;  %v38_v16 = vld [vmem:[%s6318_s0 + $0x20] sm:$0x1]  ;;  %v39_v17 = vld [vmem:[%s6318_s0 + $0x28] sm:$0x1]  ;;  %v40_v18 = vld [vmem:[%s6318_s0 + $0x30] sm:$0x1] }
   0x6   :  { %4791 = vmatpush3.bf16.msra.mxu1 %v5012_v7  ;;  %4785 = vmatprep.subr.bf16.mxu0 %v5014_v8  ;;  %v41_v19 = vld [vmem:[%s6318_s0 + $0x38] sm:$0x1]  ;;  %v66_v20 = vrot.slane %v35_v13, 7  ;;  %v69_v21 = vrot.slane %v36_v14, 6  ;;  %v72_v22 = vrot.slane %v37_v15, 5  ;;  %v75_v23 = vrot.slane %v38_v16, 4 }
   0x7   :  { %4793 = vmatprep.subr.bf16.mxu1 %v5026_v12  ;;  %v78_v24 = vrot.slane %v39_v17, 3  ;;  %v81_v25 = vrot.slane %v40_v18, 2  ;;  %v84_v26 = vrot.slane %v41_v19, 1  ;;  %v42_v27 = vld [vmem:[%s6318_s0 + $0x40] sm:$0x1] }
   0x8   :  { %v68_v28 = vsel %vm67_vm0, %v66_v20, %v34_v11  ;;  %v43_v29 = vld [vmem:[%s6318_s0 + $0x48] sm:$0x1]  ;;  %v44_v30 = vld [vmem:[%s6318_s0 + $0x50] sm:$0x1]  ;;  %v45_v31 = vld [vmem:[%s6318_s0 + $0x58] sm:$0x1] }
   0x9   :  { %4787 = vmatpush3.bf16.msra.mxu0 %v5014_v8  ;;  %v71_v32 = vsel %vm70_vm1, %v69_v21, %v68_v28  ;;  %v46_v33 = vld [vmem:[%s6318_s0 + $0x60] sm:$0x1]  ;;  %v47_v34 = vld [vmem:[%s6318_s0 + $0x68] sm:$0x1]  ;;  %v48_v35 = vld [vmem:[%s6318_s0 + $0x70] sm:$0x1] }
   0xa   :  { %4795 = vmatpush3.bf16.msra.mxu1 %v5026_v12  ;;  %v74_v36 = vsel %vm73_vm2, %v72_v22, %v71_v32  ;;  %v49_v37 = vld [vmem:[%s6318_s0 + $0x78] sm:$0x1]  ;;  %v87_v38 = vrot.slane %v43_v29, 7  ;;  %v89_v39 = vrot.slane %v44_v30, 6  ;;  %v91_v40 = vrot.slane %v45_v31, 5  ;;  %4797 = vmatprep.subr.bf16.mxu0 %v5001_v3 }
   0xb   :  { %v77_v41 = vsel %vm76_vm3, %v75_v23, %v74_v36  ;;  %v93_v42 = vrot.slane %v46_v33, 4  ;;  %v95_v43 = vrot.slane %v47_v34, 3  ;;  %4805 = vmatprep.subr.bf16.mxu1 %v5012_v7  ;;  %v256_v44 = vld [vmem:[%s6318_s0 + $0x1] sm:$0x1]  ;;  %v97_v47 = vrot.slane %v48_v35, 2 }
   0xc   :  { %v80_v45 = vsel %vm79_vm4, %v78_v24, %v77_v41  ;;  %v88_v46 = vsel %vm67_vm0, %v87_v38, %v42_v27  ;;  %v99_v48 = vrot.slane %v49_v37, 1  ;;  %v257_v49 = vld [vmem:[%s6318_s0 + $0x9] sm:$0x1]  ;;  %v258_v50 = vld [vmem:[%s6318_s0 + $0x11] sm:$0x1] }
   0xd   :  { %v83_v51 = vsel %vm82_vm5, %v81_v25, %v80_v45  ;;  %v90_v52 = vsel %vm70_vm1, %v89_v39, %v88_v46  ;;  %v259_v53 = vld [vmem:[%s6318_s0 + $0x19] sm:$0x1]  ;;  %v260_v54 = vld [vmem:[%s6318_s0 + $0x21] sm:$0x1]  ;;  %v261_v55 = vld [vmem:[%s6318_s0 + $0x29] sm:$0x1] }
   0xe   :  { %v86_v56 = vsel %vm85_vm6, %v84_v26, %v83_v51  ;;  %v92_v57 = vsel %vm73_vm2, %v91_v40, %v90_v52  ;;  %v262_v58 = vld [vmem:[%s6318_s0 + $0x31] sm:$0x1]  ;;  %v263_v59 = vld [vmem:[%s6318_s0 + $0x39] sm:$0x1]  ;;  %v288_v60 = vrot.slane %v257_v49, 7  ;;  %v290_v61 = vrot.slane %v258_v50, 6 }
   0xf   :  { %4498 = vmatprep.mubr.msk.f32.mxu0 %vm101_vm7, %v86_v56  ;;  %4509 = vmatprep.mubr.msk.f32.mxu1 %vm101_vm7, %v86_v56  ;;  %v94_v62 = vsel %vm76_vm3, %v93_v42, %v92_v57  ;;  %v292_v63 = vrot.slane %v259_v53, 5  ;;  %v294_v0 = vrot.slane %v260_v54, 4  ;;  %v296_v1 = vrot.slane %v261_v55, 3  ;;  %v264_v2 = vld [vmem:[%s6318_s0 + $0x41] sm:$0x1] }
  0x10   :  { %v96_v4 = vsel %vm79_vm4, %v95_v43, %v94_v62  ;;  %v289_v5 = vsel %vm67_vm0, %v288_v60, %v256_v44  ;;  %v298_v6 = vrot.slane %v262_v58, 2  ;;  %v300_v9 = vrot.slane %v263_v59, 1  ;;  %v265_v10 = vld [vmem:[%s6318_s0 + $0x49] sm:$0x1]  ;;  %v266_v11 = vld [vmem:[%s6318_s0 + $0x51] sm:$0x1] }
  0x11   :  { %v98_v13 = vsel %vm82_vm5, %v97_v47, %v96_v4  ;;  %v291_v14 = vsel %vm70_vm1, %v290_v61, %v289_v5  ;;  %v267_v15 = vld [vmem:[%s6318_s0 + $0x59] sm:$0x1]  ;;  %v268_v16 = vld [vmem:[%s6318_s0 + $0x61] sm:$0x1]  ;;  %v269_v17 = vld [vmem:[%s6318_s0 + $0x69] sm:$0x1] }
  0x12   :  { %v100_v18 = vsel %vm85_vm6, %v99_v48, %v98_v13  ;;  %v293_v19 = vsel %vm73_vm2, %v292_v63, %v291_v14  ;;  %v270_v20 = vld [vmem:[%s6318_s0 + $0x71] sm:$0x1]  ;;  %v271_v21 = vld [vmem:[%s6318_s0 + $0x79] sm:$0x1]  ;;  %v302_v22 = vrot.slane %v265_v10, 7  ;;  %v304_v23 = vrot.slane %v266_v11, 6 }
  0x13   :  { %4499 = vmatmul.mubr.msk.f32.vlgmr.msra.gmra.mrb[0].mxu0 %vm101_vm7, %v100_v18  ;;  %4510 = vmatmul.mubr.msk.f32.vlgmr.msra.gmra.mrb[0].mxu1 %vm101_vm7, %v100_v18  ;;  %v295_v24 = vsel %vm76_vm3, %v294_v0, %v293_v19  ;;  %v306_v25 = vrot.slane %v267_v15, 5  ;;  %v308_v26 = vrot.slane %v268_v16, 4  ;;  %v310_v27 = vrot.slane %v269_v17, 3  ;;  %v470_v28 = vld [vmem:[%s6318_s0 + $0x2] sm:$0x1] }
  0x14   :  { %4799 = vmatpush3.bf16.msra.mxu0 %v5001_v3  ;;  %4807 = vmatpush3.bf16.msra.mxu1 %v5012_v7  ;;  %v297_v29 = vsel %vm79_vm4, %v296_v1, %v295_v24  ;;  %v303_v30 = vsel %vm67_vm0, %v302_v22, %v264_v2  ;;  %v312_v31 = vrot.slane %v270_v20, 2  ;;  %v314_v32 = vrot.slane %v271_v21, 1  ;;  %v471_v33 = vld [vmem:[%s6318_s0 + $0xa] sm:$0x1]  ;;  %v472_v34 = vld [vmem:[%s6318_s0 + $0x12] sm:$0x1] }
  0x15   :  { %4801 = vmatprep.subr.bf16.mxu0 %v5014_v8  ;;  %4809 = vmatprep.subr.bf16.mxu1 %v5026_v12  ;;  %v299_v35 = vsel %vm82_vm5, %v298_v6, %v297_v29  ;;  %v305_v36 = vsel %vm70_vm1, %v304_v23, %v303_v30  ;;  %v473_v37 = vld [vmem:[%s6318_s0 + $0x1a] sm:$0x1]  ;;  %v474_v38 = vld [vmem:[%s6318_s0 + $0x22] sm:$0x1]  ;;  %v475_v39 = vld [vmem:[%s6318_s0 + $0x2a] sm:$0x1] }
  0x16   :  { %v301_v40 = vsel %vm85_vm6, %v300_v9, %v299_v35  ;;  %v307_v41 = vsel %vm73_vm2, %v306_v25, %v305_v36  ;;  %v476_v42 = vld [vmem:[%s6318_s0 + $0x32] sm:$0x1]  ;;  %v477_v43 = vld [vmem:[%s6318_s0 + $0x3a] sm:$0x1]  ;;  %v502_v44 = vrot.slane %v471_v33, 7  ;;  %v504_v45 = vrot.slane %v472_v34, 6 }
  0x17   :  { %4520 = vmatprep.mubr.msk.f32.mxu0 %vm101_vm7, %v301_v40  ;;  %4531 = vmatprep.mubr.msk.f32.mxu1 %vm101_vm7, %v301_v40  ;;  %v309_v46 = vsel %vm76_vm3, %v308_v26, %v307_v41  ;;  %v506_v47 = vrot.slane %v473_v37, 5  ;;  %v508_v48 = vrot.slane %v474_v38, 4  ;;  %v510_v49 = vrot.slane %v475_v39, 3  ;;  %v478_v50 = vld [vmem:[%s6318_s0 + $0x42] sm:$0x1] }
  0x18   :  { %4803 = vmatpush3.bf16.msra.mxu0 %v5014_v8  ;;  %4811 = vmatpush3.bf16.msra.mxu1 %v5026_v12  ;;  %v311_v51 = vsel %vm79_vm4, %v310_v27, %v309_v46  ;;  %v503_v52 = vsel %vm67_vm0, %v502_v44, %v470_v28  ;;  %v512_v53 = vrot.slane %v476_v42, 2  ;;  %v514_v54 = vrot.slane %v477_v43, 1  ;;  %v479_v55 = vld [vmem:[%s6318_s0 + $0x4a] sm:$0x1]  ;;  %v480_v56 = vld [vmem:[%s6318_s0 + $0x52] sm:$0x1] }
  0x19   :  { %v313_v57 = vsel %vm82_vm5, %v312_v31, %v311_v51  ;;  %4813 = vmatprep.subr.bf16.mxu0 %v5001_v3  ;;  %4821 = vmatprep.subr.bf16.mxu1 %v5012_v7  ;;  %v505_v58 = vsel %vm70_vm1, %v504_v45, %v503_v52  ;;  %v481_v59 = vld [vmem:[%s6318_s0 + $0x5a] sm:$0x1]  ;;  %v482_v60 = vld [vmem:[%s6318_s0 + $0x62] sm:$0x1]  ;;  %v483_v61 = vld [vmem:[%s6318_s0 + $0x6a] sm:$0x1] }
  0x1a   :  { %v315_v62 = vsel %vm85_vm6, %v314_v32, %v313_v57  ;;  %v507_v63 = vsel %vm73_vm2, %v506_v47, %v505_v58  ;;  %v484_v0 = vld [vmem:[%s6318_s0 + $0x72] sm:$0x1]  ;;  %v485_v1 = vld [vmem:[%s6318_s0 + $0x7a] sm:$0x1]  ;;  %v516_v2 = vrot.slane %v479_v55, 7  ;;  %v518_v4 = vrot.slane %v480_v56, 6 }
  0x1b   :  { %4521 = vmatmul.mubr.msk.f32.vlgmr.msra.gmra.mrb[2].mxu0 %vm101_vm7, %v315_v62  ;;  %4532 = vmatmul.mubr.msk.f32.vlgmr.msra.gmra.mrb[2].mxu1 %vm101_vm7, %v315_v62  ;;  %v509_v5 = vsel %vm76_vm3, %v508_v48, %v507_v63  ;;  %v520_v6 = vrot.slane %v481_v59, 5  ;;  %v522_v9 = vrot.slane %v482_v60, 4  ;;  %v524_v10 = vrot.slane %v483_v61, 3  ;;  %v684_v11 = vld [vmem:[%s6318_s0 + $0x3] sm:$0x1] }
  0x1c   :  { %4815 = vmatpush3.bf16.msra.mxu0 %v5001_v3  ;;  %4823 = vmatpush3.bf16.msra.mxu1 %v5012_v7  ;;  %v511_v13 = vsel %vm79_vm4, %v510_v49, %v509_v5  ;;  %v517_v14 = vsel %vm67_vm0, %v516_v2, %v478_v50  ;;  %v526_v15 = vrot.slane %v484_v0, 2  ;;  %v528_v16 = vrot.slane %v485_v1, 1  ;;  %v685_v17 = vld [vmem:[%s6318_s0 + $0xb] sm:$0x1]  ;;  %v686_v18 = vld [vmem:[%s6318_s0 + $0x13] sm:$0x1] }
  0x1d   :  { %4817 = vmatprep.subr.bf16.mxu0 %v5014_v8  ;;  %4825 = vmatprep.subr.bf16.mxu1 %v5026_v12  ;;  %v513_v19 = vsel %vm82_vm5, %v512_v53, %v511_v13  ;;  %v519_v20 = vsel %vm70_vm1, %v518_v4, %v517_v14  ;;  %v687_v21 = vld [vmem:[%s6318_s0 + $0x1b] sm:$0x1]  ;;  %v688_v22 = vld [vmem:[%s6318_s0 + $0x23] sm:$0x1]  ;;  %v689_v23 = vld [vmem:[%s6318_s0 + $0x2b] sm:$0x1] }
  0x1e   :  { %v515_v24 = vsel %vm85_vm6, %v514_v54, %v513_v19  ;;  %v521_v25 = vsel %vm73_vm2, %v520_v6, %v519_v20  ;;  %v690_v26 = vld [vmem:[%s6318_s0 + $0x33] sm:$0x1]  ;;  %v691_v27 = vld [vmem:[%s6318_s0 + $0x3b] sm:$0x1]  ;;  %v716_v28 = vrot.slane %v685_v17, 7  ;;  %v718_v29 = vrot.slane %v686_v18, 6 }
  0x1f   :  { %4542 = vmatprep.mubr.msk.f32.mxu0 %vm101_vm7, %v515_v24  ;;  %4553 = vmatprep.mubr.msk.f32.mxu1 %vm101_vm7, %v515_v24  ;;  %v523_v30 = vsel %vm76_vm3, %v522_v9, %v521_v25  ;;  %v720_v31 = vrot.slane %v687_v21, 5  ;;  %v722_v32 = vrot.slane %v688_v22, 4  ;;  %v724_v33 = vrot.slane %v689_v23, 3  ;;  %v692_v34 = vld [vmem:[%s6318_s0 + $0x43] sm:$0x1] }
  0x20   :  { %4819 = vmatpush3.bf16.msra.mxu0 %v5014_v8  ;;  %4827 = vmatpush3.bf16.msra.mxu1 %v5026_v12  ;;  %v525_v35 = vsel %vm79_vm4, %v524_v10, %v523_v30  ;;  %v717_v36 = vsel %vm67_vm0, %v716_v28, %v684_v11  ;;  %v726_v37 = vrot.slane %v690_v26, 2  ;;  %v728_v38 = vrot.slane %v691_v27, 1  ;;  %v693_v39 = vld [vmem:[%s6318_s0 + $0x4b] sm:$0x1]  ;;  %v694_v40 = vld [vmem:[%s6318_s0 + $0x53] sm:$0x1] }
  0x21   :  { %v527_v41 = vsel %vm82_vm5, %v526_v15, %v525_v35  ;;  %4829 = vmatprep.subr.bf16.mxu0 %v5001_v3  ;;  %4837 = vmatprep.subr.bf16.mxu1 %v5012_v7  ;;  %v719_v42 = vsel %vm70_vm1, %v718_v29, %v717_v36  ;;  %v695_v43 = vld [vmem:[%s6318_s0 + $0x5b] sm:$0x1]  ;;  %v696_v44 = vld [vmem:[%s6318_s0 + $0x63] sm:$0x1]  ;;  %v697_v45 = vld [vmem:[%s6318_s0 + $0x6b] sm:$0x1] }
  0x22   :  { %v529_v46 = vsel %vm85_vm6, %v528_v16, %v527_v41  ;;  %v721_v47 = vsel %vm73_vm2, %v720_v31, %v719_v42  ;;  %v698_v48 = vld [vmem:[%s6318_s0 + $0x73] sm:$0x1]  ;;  %v699_v49 = vld [vmem:[%s6318_s0 + $0x7b] sm:$0x1]  ;;  %v730_v50 = vrot.slane %v693_v39, 7  ;;  %v732_v51 = vrot.slane %v694_v40, 6 }
  0x23   :  { %4543 = vmatmul.mubr.msk.f32.vlgmr.msra.gmra.mrb[4].mxu0 %vm101_vm7, %v529_v46  ;;  %4554 = vmatmul.mubr.msk.f32.vlgmr.msra.gmra.mrb[4].mxu1 %vm101_vm7, %v529_v46  ;;  %v723_v52 = vsel %vm76_vm3, %v722_v32, %v721_v47  ;;  %v734_v53 = vrot.slane %v695_v43, 5  ;;  %v736_v54 = vrot.slane %v696_v44, 4  ;;  %v738_v55 = vrot.slane %v697_v45, 3  ;;  %v898_v56 = vld [vmem:[%s6318_s0 + $0x4] sm:$0x1] }
  0x24   :  { %4831 = vmatpush3.bf16.msra.mxu0 %v5001_v3  ;;  %4839 = vmatpush3.bf16.msra.mxu1 %v5012_v7  ;;  %v725_v57 = vsel %vm79_vm4, %v724_v33, %v723_v52  ;;  %v731_v58 = vsel %vm67_vm0, %v730_v50, %v692_v34  ;;  %v740_v59 = vrot.slane %v698_v48, 2  ;;  %v742_v60 = vrot.slane %v699_v49, 1  ;;  %v899_v61 = vld [vmem:[%s6318_s0 + $0xc] sm:$0x1]  ;;  %v900_v62 = vld [vmem:[%s6318_s0 + $0x14] sm:$0x1] }
  0x25   :  { %4833 = vmatprep.subr.bf16.mxu0 %v5014_v8  ;;  %4841 = vmatprep.subr.bf16.mxu1 %v5026_v12  ;;  %v727_v63 = vsel %vm82_vm5, %v726_v37, %v725_v57  ;;  %v733_v0 = vsel %vm70_vm1, %v732_v51, %v731_v58  ;;  %v901_v1 = vld [vmem:[%s6318_s0 + $0x1c] sm:$0x1]  ;;  %v902_v2 = vld [vmem:[%s6318_s0 + $0x24] sm:$0x1]  ;;  %v903_v4 = vld [vmem:[%s6318_s0 + $0x2c] sm:$0x1] }
  0x26   :  { %v729_v5 = vsel %vm85_vm6, %v728_v38, %v727_v63  ;;  %v735_v6 = vsel %vm73_vm2, %v734_v53, %v733_v0  ;;  %v904_v9 = vld [vmem:[%s6318_s0 + $0x34] sm:$0x1]  ;;  %v905_v10 = vld [vmem:[%s6318_s0 + $0x3c] sm:$0x1]  ;;  %v930_v11 = vrot.slane %v899_v61, 7  ;;  %v932_v13 = vrot.slane %v900_v62, 6 }
  0x27   :  { %4564 = vmatprep.mubr.msk.f32.mxu0 %vm101_vm7, %v729_v5  ;;  %4575 = vmatprep.mubr.msk.f32.mxu1 %vm101_vm7, %v729_v5  ;;  %v737_v14 = vsel %vm76_vm3, %v736_v54, %v735_v6  ;;  %v934_v15 = vrot.slane %v901_v1, 5  ;;  %v936_v16 = vrot.slane %v902_v2, 4  ;;  %v938_v17 = vrot.slane %v903_v4, 3  ;;  %v906_v18 = vld [vmem:[%s6318_s0 + $0x44] sm:$0x1]  ;;  %v29_v53 = vld [vmem:[%s6320_s3 + $0x8] sm:$0xff] }
  0x28   :  { %4835 = vmatpush3.bf16.msra.mxu0 %v5014_v8  ;;  %4843 = vmatpush3.bf16.msra.mxu1 %v5026_v12  ;;  %v739_v19 = vsel %vm79_vm4, %v738_v55, %v737_v14  ;;  %v931_v20 = vsel %vm67_vm0, %v930_v11, %v898_v56  ;;  %v940_v21 = vrot.slane %v904_v9, 2  ;;  %v942_v22 = vrot.slane %v905_v10, 1  ;;  %v907_v23 = vld [vmem:[%s6318_s0 + $0x4c] sm:$0x1]  ;;  %v908_v24 = vld [vmem:[%s6318_s0 + $0x54] sm:$0x1] }
  0x29   :  { %v741_v25 = vsel %vm82_vm5, %v740_v59, %v739_v19  ;;  %4845 = vmatprep.subr.bf16.mxu0 %v5001_v3  ;;  %4853 = vmatprep.subr.bf16.mxu1 %v5012_v7  ;;  %v933_v26 = vsel %vm70_vm1, %v932_v13, %v931_v20  ;;  %v909_v27 = vld [vmem:[%s6318_s0 + $0x5c] sm:$0x1]  ;;  %v910_v28 = vld [vmem:[%s6318_s0 + $0x64] sm:$0x1]  ;;  %v911_v29 = vld [vmem:[%s6318_s0 + $0x6c] sm:$0x1] }
  0x2a   :  { %v743_v30 = vsel %vm85_vm6, %v742_v60, %v741_v25  ;;  %v935_v31 = vsel %vm73_vm2, %v934_v15, %v933_v26  ;;  %v912_v32 = vld [vmem:[%s6318_s0 + $0x74] sm:$0x1]  ;;  %v944_v33 = vrot.slane %v907_v23, 7  ;;  %v946_v34 = vrot.slane %v908_v24, 6  ;;  %v913_v36 = vld [vmem:[%s6318_s0 + $0x7c] sm:$0x1] }
  0x2b   :  { %4565 = vmatmul.mubr.msk.f32.vlgmr.msra.gmra.mrb[6].mxu0 %vm101_vm7, %v743_v30  ;;  %4576 = vmatmul.mubr.msk.f32.vlgmr.msra.gmra.mrb[6].mxu1 %vm101_vm7, %v743_v30  ;;  %v937_v35 = vsel %vm76_vm3, %v936_v16, %v935_v31  ;;  %v948_v37 = vrot.slane %v909_v27, 5  ;;  %v950_v38 = vrot.slane %v910_v28, 4  ;;  %v952_v41 = vrot.slane %v911_v29, 3  ;;  %v31_v50 = vld [vmem:[%s6319_s4] sm:$0xff]  ;;  %v5465_v15 = vld [vmem:[%s6320_s3 + $0x10] sm:$0x1] }
  0x2c   :  { %4847 = vmatpush3.bf16.msra.mxu0 %v5001_v3  ;;  %4855 = vmatpush3.bf16.msra.mxu1 %v5012_v7  ;;  %v939_v39 = vsel %vm79_vm4, %v938_v17, %v937_v35  ;;  %v945_v40 = vsel %vm67_vm0, %v944_v33, %v906_v18  ;;  %v954_v44 = vrot.slane %v912_v32, 2  ;;  %v956_v46 = vrot.slane %v913_v36, 1  ;;  %v28_v52 = vld [vmem:[%s6320_s3] sm:$0xff] }
  0x2d   :  { %4849 = vmatprep.subr.bf16.mxu0 %v5014_v8  ;;  %4857 = vmatprep.subr.bf16.mxu1 %v5026_v12  ;;  %v941_v42 = vsel %vm82_vm5, %v940_v21, %v939_v39  ;;  %v947_v43 = vsel %vm70_vm1, %v946_v34, %v945_v40  ;;  %v5425_v54 = vpack.c.bf16 %v29_v53, %v28_v52 }
  0x2e   :  { %v943_v45 = vsel %vm85_vm6, %v942_v22, %v941_v42  ;;  %v949_v3 = vsel %vm73_vm2, %v948_v37, %v947_v43 }
  0x2f   :  { %4586 = vmatprep.mubr.msk.f32.mxu0 %vm101_vm7, %v943_v45  ;;  %4597 = vmatprep.mubr.msk.f32.mxu1 %vm101_vm7, %v943_v45  ;;  %v951_v7 = vsel %vm76_vm3, %v950_v38, %v949_v3 }
  0x30   :  { %4851 = vmatpush3.bf16.msra.mxu0 %v5014_v8  ;;  %4859 = vmatpush3.bf16.msra.mxu1 %v5026_v12  ;;  %v953_v47 = vsel %vm79_vm4, %v952_v41, %v951_v7  ;;  %v32_v8 = vld [vmem:[%s6319_s4 + $0x8] sm:$0xff]  ;;  %v5406_v12 = vld [vmem:[%s6319_s4 + $0x10] sm:$0x1] }
  0x31   :  { %v955_v48 = vsel %vm82_vm5, %v954_v44, %v953_v47  ;;  %v5400_v51 = vpack.c.bf16 %v32_v8, %v31_v50 }
  0x32   :  { %v957_v49 = vsel %vm85_vm6, %v956_v46, %v955_v48 }
  0x33   :  { %4587 = vmatmul.mubr.msk.f32.vlgmr.msra.gmra.mrb[8].mxu0 %vm101_vm7, %v957_v49  ;;  %4598 = vmatmul.mubr.msk.f32.vlgmr.msra.gmra.mrb[8].mxu1 %vm101_vm7, %v957_v49 }
  0x34   :  { %4861 = vmatprep.subr.bf16.mxu0 %v5400_v51  ;;  %4869 = vmatprep.subr.bf16.mxu1 %v5400_v51 }
  0x35   :  { %4863 = vmatpush3.bf16.msra.mxu0 %v5400_v51  ;;  %4871 = vmatpush3.bf16.msra.mxu1 %v5400_v51 }
  0x36   :  { %4604 = vmatprep.subr.msk.mxu0 %vm1131_vm8, %v5406_v12  ;;  %4622 = vmatprep.subr.msk.mxu1 %vm1131_vm8, %v5406_v12 }
  0x39   :  { %4605 = vmatpush3.msk.msra.mxu0 %vm1131_vm8, %v5406_v12  ;;  %4623 = vmatpush3.msk.msra.mxu1 %vm1131_vm8, %v5406_v12 }
  0x3a   :  { %4865 = vmatprep.subr.bf16.mxu0 %v5425_v54  ;;  %4873 = vmatprep.subr.bf16.mxu1 %v5425_v54 }
  0xe6   :  { %v5429_v55 = vpop.f32.mrb[0].mxu0  ;;  %v5431_v56 = vpop.f32.mrb[0].mxu1 }
  0xe7   :  { %v5433_v57 = vpop.f32.mrb[1].mxu0  ;;  %v5435_v58 = vpop.f32.mrb[1].mxu1 }
  0xee   :  { %v5437_v59 = vpop.f32.mrb[2].mxu0  ;;  %v5439_v60 = vpop.f32.mrb[2].mxu1 }
  0xef   :  { %v5441_v61 = vpop.f32.mrb[3].mxu0  ;;  %v5443_v62 = vpop.f32.mrb[3].mxu1  ;;  %v1119_v63 = vmul.f32 %v5439_v60, %v5429_v55  ;;  %v1121_v0 = vmul.f32 %v5437_v59, %v5431_v56  ;;  %v1113_v1 = vmul.f32 %v5437_v59, %v5429_v55  ;;  %v1115_v2 = vmul.f32 %v5439_v60, %v5431_v56 }
  0xf0   :  { %v1118_v4 = vmul.f32 %v5443_v62, %v5433_v57  ;;  %v1120_v5 = vmul.f32 %v5441_v61, %v5435_v58  ;;  %v1112_v6 = vmul.f32 %v5441_v61, %v5433_v57  ;;  %v1114_v9 = vmul.f32 %v5443_v62, %v5435_v58 }
  0xf1   :  { %v1123_v10 = vadd.f32 %v1121_v0, %v1119_v63  ;;  %v1117_v11 = vsub.f32 %v1113_v1, %v1115_v2 }
  0xf2   :  { %v1122_v13 = vadd.f32 %v1120_v5, %v1118_v4  ;;  %v1116_v14 = vsub.f32 %v1112_v6, %v1114_v9 }
  0xf4   :  { %4606 = vmatprep.mubr.msk.f32.mxu0 %vm1124_vm9, %v1122_v13 }
  0xf5   :  { %4607 = vmatmul.mubr.msk.f32.vlgmr.msra.gmra.mrb[10].mxu0 %vm1124_vm9, %v1123_v10 }
  0xf6   :  { %v5468_v16 = vpop.f32.mrb[4].mxu0  ;;  %v5470_v17 = vpop.f32.mrb[4].mxu1  ;;  %4615 = vmatprep.mubr.msk.f32.mxu0 %vm1124_vm9, %v1116_v14  ;;  %4867 = vmatpush3.bf16.msra.mxu0 %v5425_v54 }
  0xf7   :  { %v5474_v18 = vpop.f32.mrb[5].mxu0  ;;  %v5476_v19 = vpop.f32.mrb[5].mxu1  ;;  %4613 = vmatprep.subr.msk.mxu0 %vm1131_vm8, %v5465_v15  ;;  %v1434_v20 = vmul.f32 %v5470_v17, %v5429_v55  ;;  %v1436_v21 = vmul.f32 %v5468_v16, %v5431_v56  ;;  %v5486_v22 = vmul.f32 %v5468_v16, %v5429_v55  ;;  %v1430_v23 = vmul.f32 %v5470_v17, %v5431_v56 }
  0xf8   :  { %v1433_v24 = vmul.f32 %v5476_v19, %v5433_v57  ;;  %v1435_v25 = vmul.f32 %v5474_v18, %v5435_v58  ;;  %v1427_v26 = vmul.f32 %v5474_v18, %v5433_v57  ;;  %v1429_v27 = vmul.f32 %v5476_v19, %v5435_v58 }
  0xf9   :  { %v1438_v28 = vadd.f32 %v1436_v21, %v1434_v20  ;;  %v1432_v29 = vsub.f32 %v5486_v22, %v1430_v23  ;;  %v2351_v30 = vmul.f32 %v5476_v19, %v5441_v61  ;;  %v2353_v31 = vmul.f32 %v5474_v18, %v5443_v62 }
  0xfa   :  { %4614 = vmatpush3.msk.msra.mxu0 %vm1131_vm8, %v5465_v15  ;;  %v1437_v32 = vadd.f32 %v1435_v25, %v1433_v24  ;;  %v1431_v33 = vsub.f32 %v1427_v26, %v1429_v27  ;;  %v2352_v34 = vmul.f32 %v5470_v17, %v5437_v59  ;;  %v2354_v35 = vmul.f32 %v5468_v16, %v5439_v60 }
  0xfb   :  { %4877 = vmatprep.subr.bf16.mxu0 %v5400_v51  ;;  %v5510_v36 = vadd.f32 %v2353_v31, %v2351_v30  ;;  %v5514_v37 = vmul.f32 %v5474_v18, %v5441_v61  ;;  %v5518_v38 = vmul.f32 %v5476_v19, %v5443_v62  ;;  %v5522_v39 = vmul.f32 %v5468_v16, %v5437_v59 }
  0xfc   :  { %4624 = vmatprep.mubr.msk.f32.mxu1 %vm1124_vm9, %v1437_v32  ;;  %v5525_v40 = vadd.f32 %v2354_v35, %v2352_v34  ;;  %v5529_v41 = vmul.f32 %v5470_v17, %v5439_v60 }
  0xfd   :  { %4616 = vmatmul.mubr.msk.f32.vlgmr.msra.gmra.mrb[10].mxu0 %vm1124_vm9, %v1117_v11  ;;  %4625 = vmatmul.mubr.msk.f32.vlgmr.msra.gmra.mrb[10].mxu1 %vm1124_vm9, %v1438_v28  ;;  %v2349_v42 = vsub.f32 %v5514_v37, %v5518_v38 }
  0xfe   :  { %v5535_v43 = vpop.f32.mrb[6].mxu0  ;;  %v5537_v44 = vpop.f32.mrb[6].mxu1  ;;  %4633 = vmatprep.mubr.msk.f32.mxu1 %vm1124_vm9, %v1431_v33  ;;  %4875 = vmatpush3.bf16.msra.mxu1 %v5425_v54  ;;  %v2350_v45 = vsub.f32 %v5522_v39, %v5529_v41  ;;  %v1300_v39 = vlaneseq }
  0xff   :  { %v5543_v3 = vpop.f32.mrb[7].mxu0  ;;  %v5545_v46 = vpop.f32.mrb[7].mxu1  ;;  %4879 = vmatpush3.bf16.msra.mxu0 %v5400_v51  ;;  %4631 = vmatprep.subr.msk.mxu1 %vm1131_vm8, %v5465_v15  ;;  %v1740_v7 = vmul.f32 %v5537_v44, %v5429_v55  ;;  %v1742_v47 = vmul.f32 %v5535_v43, %v5431_v56  ;;  %v5556_v48 = vmul.f32 %v5535_v43, %v5429_v55 }
 0x100   :  { %4640 = vmatprep.subr.msk.mxu0 %vm1131_vm8, %v5406_v12  ;;  %v1739_v49 = vmul.f32 %v5545_v46, %v5433_v57  ;;  %v1741_v50 = vmul.f32 %v5543_v3, %v5435_v58  ;;  %v1733_v8 = vmul.f32 %v5543_v3, %v5433_v57  ;;  %v1735_v52 = vmul.f32 %v5545_v46, %v5435_v58 }
 0x101   :  { %v1744_v53 = vadd.f32 %v1742_v47, %v1740_v7  ;;  %v1736_v63 = vmul.f32 %v5537_v44, %v5431_v56  ;;  %v2657_v0 = vmul.f32 %v5545_v46, %v5441_v61  ;;  %v2659_v1 = vmul.f32 %v5543_v3, %v5443_v62 }
 0x102   :  { %4632 = vmatpush3.msk.msra.mxu1 %vm1131_vm8, %v5465_v15  ;;  %v1743_v2 = vadd.f32 %v1741_v50, %v1739_v49  ;;  %v1737_v4 = vsub.f32 %v1733_v8, %v1735_v52  ;;  %v2658_v5 = vmul.f32 %v5537_v44, %v5437_v59  ;;  %v2660_v6 = vmul.f32 %v5535_v43, %v5439_v60 }
 0x103   :  { %4641 = vmatpush3.msk.msra.mxu0 %vm1131_vm8, %v5406_v12  ;;  %4885 = vmatprep.subr.bf16.mxu1 %v5400_v51  ;;  %v1738_v9 = vsub.f32 %v5556_v48, %v1736_v63  ;;  %v5584_v10 = vadd.f32 %v2659_v1, %v2657_v0  ;;  %v5588_v11 = vmul.f32 %v5543_v3, %v5441_v61 }
 0x104   :  { %4642 = vmatprep.mubr.msk.f32.mxu0 %vm1124_vm9, %v1743_v2  ;;  %4881 = vmatprep.subr.bf16.mxu0 %v5425_v54  ;;  %v5592_v13 = vadd.f32 %v2660_v6, %v2658_v5  ;;  %v5596_v14 = vmul.f32 %v5545_v46, %v5443_v62  ;;  %v5600_v20 = vmul.f32 %v5535_v43, %v5437_v59 }
 0x105   :  { %4634 = vmatmul.mubr.msk.f32.vlgmr.msra.gmra.mrb[10].mxu1 %vm1124_vm9, %v1432_v29  ;;  %4643 = vmatmul.mubr.msk.f32.vlgmr.msra.gmra.mrb[12].mxu0 %vm1124_vm9, %v1744_v53  ;;  %v5606_v21 = vmul.f32 %v5537_v44, %v5439_v60  ;;  %v3269_v22 = vmul.f32 %v5545_v46, %v5474_v18  ;;  %v3271_v23 = vmul.f32 %v5543_v3, %v5476_v19 }
 0x106   :  { %v5612_v24 = vpop.f32.mrb[8].mxu0  ;;  %v5614_v25 = vpop.f32.mrb[8].mxu1  ;;  %4651 = vmatprep.mubr.msk.f32.mxu0 %vm1124_vm9, %v1737_v4  ;;  %4883 = vmatpush3.bf16.msra.mxu0 %v5425_v54  ;;  %v2655_v26 = vsub.f32 %v5588_v11, %v5596_v14  ;;  %v3270_v27 = vmul.f32 %v5537_v44, %v5468_v16  ;;  %v3272_v28 = vmul.f32 %v5535_v43, %v5470_v17 }
 0x107   :  { %v5624_v29 = vpop.f32.mrb[9].mxu0  ;;  %v5626_v30 = vpop.f32.mrb[9].mxu1  ;;  %4887 = vmatpush3.bf16.msra.mxu1 %v5400_v51  ;;  %4649 = vmatprep.subr.msk.mxu0 %vm1131_vm8, %v5465_v15  ;;  %v2046_v31 = vmul.f32 %v5614_v25, %v5429_v55  ;;  %v2048_v32 = vmul.f32 %v5612_v24, %v5431_v56  ;;  %v5637_v33 = vmul.f32 %v5612_v24, %v5429_v55 }
 0x108   :  { %4658 = vmatprep.subr.msk.mxu1 %vm1131_vm8, %v5406_v12  ;;  %v2045_v34 = vmul.f32 %v5626_v30, %v5433_v57  ;;  %v2047_v35 = vmul.f32 %v5624_v29, %v5435_v58  ;;  %v2039_v7 = vmul.f32 %v5624_v29, %v5433_v57  ;;  %v2041_v47 = vmul.f32 %v5626_v30, %v5435_v58 }
 0x109   :  { %v2050_v48 = vadd.f32 %v2048_v32, %v2046_v31  ;;  %v2042_v55 = vmul.f32 %v5614_v25, %v5431_v56  ;;  %v2963_v49 = vmul.f32 %v5626_v30, %v5441_v61  ;;  %v2965_v50 = vmul.f32 %v5624_v29, %v5443_v62 }
 0x10a   :  { %4650 = vmatpush3.msk.msra.mxu0 %vm1131_vm8, %v5465_v15  ;;  %v2049_v8 = vadd.f32 %v2047_v35, %v2045_v34  ;;  %v2043_v52 = vsub.f32 %v2039_v7, %v2041_v47  ;;  %v2964_v57 = vmul.f32 %v5614_v25, %v5437_v59  ;;  %v2966_v58 = vmul.f32 %v5612_v24, %v5439_v60 }
 0x10b   :  { %4659 = vmatpush3.msk.msra.mxu1 %vm1131_vm8, %v5406_v12  ;;  %4893 = vmatprep.subr.bf16.mxu0 %v5400_v51  ;;  %v2044_v56 = vsub.f32 %v5637_v33, %v2042_v55  ;;  %v5665_v53 = vadd.f32 %v2965_v50, %v2963_v49  ;;  %v5669_v63 = vmul.f32 %v5624_v29, %v5441_v61 }
 0x10c   :  { %4660 = vmatprep.mubr.msk.f32.mxu1 %vm1124_vm9, %v2049_v8  ;;  %4889 = vmatprep.subr.bf16.mxu1 %v5425_v54  ;;  %v5673_v0 = vadd.f32 %v2966_v58, %v2964_v57  ;;  %v5677_v1 = vmul.f32 %v5626_v30, %v5443_v62  ;;  %v2656_v2 = vsub.f32 %v5600_v20, %v5606_v21 }
 0x10d   :  { %4652 = vmatmul.mubr.msk.f32.vlgmr.msra.gmra.mrb[12].mxu0 %vm1124_vm9, %v1738_v9  ;;  %4661 = vmatmul.mubr.msk.f32.vlgmr.msra.gmra.mrb[12].mxu1 %vm1124_vm9, %v2050_v48  ;;  %v5683_v4 = vadd.f32 %v3271_v23, %v3269_v22  ;;  %v5687_v61 = vmul.f32 %v5612_v24, %v5437_v59  ;;  %v5691_v5 = vmul.f32 %v5614_v25, %v5439_v60 }
 0x10e   :  { %4895 = vmatpush3.bf16.msra.mxu0 %v5400_v51  ;;  %4891 = vmatpush3.bf16.msra.mxu1 %v5425_v54  ;;  %v2961_v62 = vsub.f32 %v5669_v63, %v5677_v1  ;;  %v5697_v6 = vadd.f32 %v3272_v28, %v3270_v27  ;;  %v5701_v9 = vmul.f32 %v5543_v3, %v5474_v18 }
 0x10f   :  { %4669 = vmatprep.mubr.msk.f32.mxu1 %vm1124_vm9, %v2043_v52  ;;  %4678 = vmatprep.mubr.msk.f32.mxu0 %vm1124_vm9, %v5510_v36  ;;  %v2962_v59 = vsub.f32 %v5687_v61, %v5691_v5  ;;  %v5710_v60 = vmul.f32 %v5545_v46, %v5476_v19  ;;  %v3575_v22 = vmul.f32 %v5626_v30, %v5474_v18 }
 0x110   :  { %4676 = vmatprep.subr.msk.mxu0 %vm1131_vm8, %v5406_v12  ;;  %4667 = vmatprep.subr.msk.mxu1 %vm1131_vm8, %v5465_v15  ;;  %v3577_v23 = vmul.f32 %v5624_v29, %v5476_v19  ;;  %v3576_v36 = vmul.f32 %v5614_v25, %v5468_v16  ;;  %v3578_v27 = vmul.f32 %v5612_v24, %v5470_v17 }
 0x111   :  { %v3267_v28 = vsub.f32 %v5701_v9, %v5710_v60  ;;  %v5728_v31 = vmul.f32 %v5624_v29, %v5474_v18  ;;  %v5732_v32 = vmul.f32 %v5626_v30, %v5476_v19  ;;  %v5736_v33 = vmul.f32 %v5535_v43, %v5468_v16 }
 0x112   :  { %4677 = vmatpush3.msk.msra.mxu0 %vm1131_vm8, %v5406_v12  ;;  %4668 = vmatpush3.msk.msra.mxu1 %vm1131_vm8, %v5465_v15  ;;  %v5742_v34 = vadd.f32 %v3577_v23, %v3575_v22  ;;  %v5744_v35 = vadd.f32 %v3578_v27, %v3576_v36  ;;  %v5748_v18 = vmul.f32 %v5537_v44, %v5470_v17 }
 0x113   :  { %4679 = vmatmul.mubr.msk.f32.vlgmr.msra.gmra.mrb[14].mxu0 %vm1124_vm9, %v5525_v40  ;;  %4897 = vmatprep.subr.bf16.mxu0 %v5425_v54  ;;  %v3573_v19 = vsub.f32 %v5728_v31, %v5732_v32  ;;  %v3881_v7 = vmul.f32 %v5626_v30, %v5543_v3  ;;  %v3883_v47 = vmul.f32 %v5624_v29, %v5545_v46 }
 0x114   :  { %4687 = vmatprep.mubr.msk.f32.mxu0 %vm1124_vm9, %v2349_v42  ;;  %4899 = vmatpush3.bf16.msra.mxu0 %v5425_v54  ;;  %v3268_v40 = vsub.f32 %v5736_v33, %v5748_v18  ;;  %v5768_v48 = vmul.f32 %v5612_v24, %v5468_v16  ;;  %v5772_v55 = vmul.f32 %v5614_v25, %v5470_v17 }
 0x115   :  { %4901 = vmatprep.subr.bf16.mxu1 %v5400_v51  ;;  %4670 = vmatmul.mubr.msk.f32.vlgmr.msra.gmra.mrb[12].mxu1 %vm1124_vm9, %v2044_v56  ;;  %v3885_v37 = vadd.f32 %v3883_v47, %v3881_v7  ;;  %v3882_v38 = vmul.f32 %v5614_v25, %v5535_v43  ;;  %v3884_v42 = vmul.f32 %v5612_v24, %v5537_v44 }
 0x116   :  { %4903 = vmatpush3.bf16.msra.mxu1 %v5400_v51  ;;  %4696 = vmatprep.mubr.msk.f32.mxu1 %vm1124_vm9, %v5584_v10  ;;  %v3574_v16 = vsub.f32 %v5768_v48, %v5772_v55  ;;  %v5787_v17 = vmul.f32 %v5624_v29, %v5543_v3  ;;  %v3877_v49 = vmul.f32 %v5626_v30, %v5545_v46 }
 0x117   :  { %4685 = vmatprep.subr.msk.mxu0 %vm1131_vm8, %v5465_v15  ;;  %4694 = vmatprep.subr.msk.mxu1 %vm1131_vm8, %v5406_v12  ;;  %v3886_v50 = vadd.f32 %v3884_v42, %v3882_v38  ;;  %v3876_v10 = vmul.f32 %v5612_v24, %v5535_v43  ;;  %v3878_v8 = vmul.f32 %v5614_v25, %v5537_v44  ;;  %v1301_v43 = vshrl.u32 %v1300_v39, 7 }
 0x118   :  { %4686 = vmatpush3.msk.msra.mxu0 %vm1131_vm8, %v5465_v15  ;;  %v3879_v3 = vsub.f32 %v5787_v17, %v3877_v49 }
 0x119   :  { %4909 = vmatprep.subr.bf16.mxu0 %v5400_v51  ;;  %v3880_v46 = vsub.f32 %v3876_v10, %v3878_v8 }
 0x11a   :  { %4695 = vmatpush3.msk.msra.mxu1 %vm1131_vm8, %v5406_v12 }
 0x11b   :  { %4688 = vmatmul.mubr.msk.f32.vlgmr.msra.gmra.mrb[14].mxu0 %vm1124_vm9, %v2350_v45  ;;  %4697 = vmatmul.mubr.msk.f32.vlgmr.msra.gmra.mrb[14].mxu1 %vm1124_vm9, %v5592_v13 }
 0x11c   :  { %4905 = vmatprep.subr.bf16.mxu1 %v5425_v54  ;;  %4911 = vmatpush3.bf16.msra.mxu0 %v5400_v51 }
 0x11d   :  { %4907 = vmatpush3.bf16.msra.mxu1 %v5425_v54  ;;  %4705 = vmatprep.mubr.msk.f32.mxu1 %vm1124_vm9, %v2655_v26 }
 0x11e   :  { %4714 = vmatprep.mubr.msk.f32.mxu0 %vm1124_vm9, %v5665_v53  ;;  %4712 = vmatprep.subr.msk.mxu0 %vm1131_vm8, %v5406_v12 }
 0x11f   :  { %4703 = vmatprep.subr.msk.mxu1 %vm1131_vm8, %v5465_v15 }
 0x120   :  { %4713 = vmatpush3.msk.msra.mxu0 %vm1131_vm8, %v5406_v12 }
 0x121   :  { %4704 = vmatpush3.msk.msra.mxu1 %vm1131_vm8, %v5465_v15  ;;  %4715 = vmatmul.mubr.msk.f32.vlgmr.msra.gmra.mrb[16].mxu0 %vm1124_vm9, %v5673_v0 }
 0x122   :  { %4913 = vmatprep.subr.bf16.mxu0 %v5425_v54  ;;  %4723 = vmatprep.mubr.msk.f32.mxu0 %vm1124_vm9, %v2961_v62 }
 0x123   :  { %4915 = vmatpush3.bf16.msra.mxu0 %v5425_v54  ;;  %4917 = vmatprep.subr.bf16.mxu1 %v5400_v51 }
 0x124   :  { %4706 = vmatmul.mubr.msk.f32.vlgmr.msra.gmra.mrb[14].mxu1 %vm1124_vm9, %v2656_v2  ;;  %4721 = vmatprep.subr.msk.mxu0 %vm1131_vm8, %v5465_v15 }
 0x125   :  { %4919 = vmatpush3.bf16.msra.mxu1 %v5400_v51  ;;  %4732 = vmatprep.mubr.msk.f32.mxu1 %vm1124_vm9, %v5683_v4 }
 0x126   :  { %4730 = vmatprep.subr.msk.mxu1 %vm1131_vm8, %v5406_v12 }
 0x127   :  { %4722 = vmatpush3.msk.msra.mxu0 %vm1131_vm8, %v5465_v15 }
 0x128   :  { %4925 = vmatprep.subr.bf16.mxu0 %v5400_v51 }
 0x129   :  { %4731 = vmatpush3.msk.msra.mxu1 %vm1131_vm8, %v5406_v12  ;;  %4724 = vmatmul.mubr.msk.f32.vlgmr.msra.gmra.mrb[16].mxu0 %vm1124_vm9, %v2962_v59 }
 0x12a   :  { %4733 = vmatmul.mubr.msk.f32.vlgmr.msra.gmra.mrb[16].mxu1 %vm1124_vm9, %v5697_v6  ;;  %4921 = vmatprep.subr.bf16.mxu1 %v5425_v54 }
 0x12b   :  { %4927 = vmatpush3.bf16.msra.mxu0 %v5400_v51  ;;  %4923 = vmatpush3.bf16.msra.mxu1 %v5425_v54 }
 0x12c   :  { %4741 = vmatprep.mubr.msk.f32.mxu1 %vm1124_vm9, %v3267_v28  ;;  %4750 = vmatprep.mubr.msk.f32.mxu0 %vm1124_vm9, %v5742_v34 }
 0x12d   :  { %4748 = vmatprep.subr.msk.mxu0 %vm1131_vm8, %v5406_v12  ;;  %4739 = vmatprep.subr.msk.mxu1 %vm1131_vm8, %v5465_v15 }
 0x12f   :  { %4749 = vmatpush3.msk.msra.mxu0 %vm1131_vm8, %v5406_v12  ;;  %4740 = vmatpush3.msk.msra.mxu1 %vm1131_vm8, %v5465_v15 }
 0x130   :  { %4751 = vmatmul.mubr.msk.f32.vlgmr.msra.gmra.mrb[18].mxu0 %vm1124_vm9, %v5744_v35  ;;  %4929 = vmatprep.subr.bf16.mxu0 %v5425_v54 }
 0x131   :  { %4759 = vmatprep.mubr.msk.f32.mxu0 %vm1124_vm9, %v3573_v19  ;;  %4933 = vmatprep.subr.bf16.mxu1 %v5400_v51 }
 0x132   :  { %4742 = vmatmul.mubr.msk.f32.vlgmr.msra.gmra.mrb[16].mxu1 %vm1124_vm9, %v3268_v40  ;;  %4931 = vmatpush3.bf16.msra.mxu0 %v5425_v54 }
 0x133   :  { %4935 = vmatpush3.bf16.msra.mxu1 %v5400_v51  ;;  %4768 = vmatprep.mubr.msk.f32.mxu1 %vm1124_vm9, %v3885_v37  ;;  %v4961_v51 = vmov 1966171168  }
 0x134   :  { %4757 = vmatprep.subr.msk.mxu0 %vm1131_vm8, %v5465_v15  ;;  %4766 = vmatprep.subr.msk.mxu1 %vm1131_vm8, %v5406_v12 }
 0x136   :  { %4758 = vmatpush3.msk.msra.mxu0 %vm1131_vm8, %v5465_v15 }
 0x137   :  { %4767 = vmatpush3.msk.msra.mxu1 %vm1131_vm8, %v5406_v12  ;;  %v1298_v12 = vunpack.c.l.s4 %v4961_v51 }
 0x138   :  { %4760 = vmatmul.mubr.msk.f32.vlgmr.msra.gmra.mrb[18].mxu0 %vm1124_vm9, %v3574_v16  ;;  %4769 = vmatmul.mubr.msk.f32.vlgmr.msra.gmra.mrb[18].mxu1 %vm1124_vm9, %v3886_v50 }
 0x139   :  { %4937 = vmatprep.subr.bf16.mxu1 %v5425_v54  ;;  %4777 = vmatprep.mubr.msk.f32.mxu1 %vm1124_vm9, %v3879_v3  ;;  %v1299_v41 = vunpack.c.0.s8 %v1298_v12 }
 0x13a   :  { %4939 = vmatpush3.bf16.msra.mxu1 %v5425_v54 }
 0x13b   :  { %4775 = vmatprep.subr.msk.mxu1 %vm1131_vm8, %v5465_v15  ;;  %v5906_v44 = vsub.s32 %v1299_v41, %v1301_v43 }
 0x13e   :  { %4776 = vmatpush3.msk.msra.mxu1 %vm1131_vm8, %v5465_v15 }
 0x140   :  { %4778 = vmatmul.mubr.msk.f32.vlgmr.msra.gmra.mrb[18].mxu1 %vm1124_vm9, %v3880_v46 }
 0x1d0   :  { %v4617_v45 = vpop.f32.mrb[10].mxu0 }
 0x1d1   :  { %v1345_v11 = vcombine.high %v4617_v45, %v4617_v45  ;;  %v1352_v13 = vrot.slane %v4617_v45, %v5906_v44  ;;  %v1285_v54 = vpop.f32.mrb[11].mxu0 }
 0x1d2   :  { %v1296_v14 = vcombine.high %v1285_v54, %v1285_v54  ;;  %v1303_v20 = vrot.slane %v1285_v54, %v5906_v44 }
 0x1d3   :  { %v1359_v15 = vrot.slane %v1345_v11, %v5906_v44  ;;  %v1360_v21 = vcombine.high %v1352_v13, %v1352_v13  ;;  %v1368_v24 = vrot.slane %v1352_v13, %v5906_v44 }
 0x1d4   :  { %v1310_v25 = vrot.slane %v1296_v14, %v5906_v44  ;;  %v1311_v26 = vcombine.high %v1303_v20, %v1303_v20  ;;  %v1319_v29 = vrot.slane %v1303_v20, %v5906_v44 }
 0x1d5   :  { %v1361_v30 = vcombine.high %v1359_v15, %v1359_v15  ;;  %v1375_v52 = vrot.slane %v1359_v15, %v5906_v44  ;;  %v1382_v57 = vrot.slane %v1360_v21, %v5906_v44  ;;  %v1390_v58 = vcombine.high %v1368_v24, %v1368_v24  ;;  %1419 = vst.msk [vmem:[#allocation2 + $0x80] sm:$0x1] %vm1410_vm10, %v1368_v24 }
 0x1d6   :  { %v1312_v56 = vcombine.high %v1310_v25, %v1310_v25  ;;  %v1326_v53 = vrot.slane %v1310_v25, %v5906_v44  ;;  %v1333_v63 = vrot.slane %v1311_v26, %v5906_v44  ;;  %v1341_v0 = vcombine.high %v1319_v29, %v1319_v29  ;;  %1411 = vst.msk [vmem:[#allocation2] sm:$0x1] %vm1410_vm10, %v1319_v29 }
 0x1d7   :  { %v1389_v1 = vrot.slane %v1361_v30, %v5906_v44  ;;  %v1391_v2 = vcombine.high %v1375_v52, %v1375_v52  ;;  %v1392_v4 = vcombine.high %v1382_v57, %v1382_v57  ;;  %1420 = vst.msk [vmem:[#allocation2 + $0x90] sm:$0x1] %vm1410_vm10, %v1382_v57  ;;  %1421 = vst.msk [vmem:[#allocation2 + $0xa0] sm:$0x1] %vm1410_vm10, %v1390_v58 }
 0x1d8   :  { %1423 = vst.msk [vmem:[#allocation2 + $0xc0] sm:$0x1] %vm1410_vm10, %v1375_v52  ;;  %v1340_v61 = vrot.slane %v1312_v56, %v5906_v44  ;;  %v1342_v5 = vcombine.high %v1326_v53, %v1326_v53  ;;  %v1343_v62 = vcombine.high %v1333_v63, %v1333_v63  ;;  %1412 = vst.msk [vmem:[#allocation2 + $0x10] sm:$0x1] %vm1410_vm10, %v1333_v63  ;;  %v4635_v6 = vpop.f32.mrb[10].mxu1 }
 0x1d9   :  { %1413 = vst.msk [vmem:[#allocation2 + $0x20] sm:$0x1] %vm1410_vm10, %v1341_v0  ;;  %1415 = vst.msk [vmem:[#allocation2 + $0x40] sm:$0x1] %vm1410_vm10, %v1326_v53  ;;  %v1393_v9 = vcombine.high %v1389_v1, %v1389_v1  ;;  %v1652_v59 = vcombine.high %v4635_v6, %v4635_v6  ;;  %v1659_v60 = vrot.slane %v4635_v6, %v5906_v44  ;;  %v1592_v22 = vpop.f32.mrb[11].mxu1 }
 0x1da   :  { %1422 = vst.msk [vmem:[#allocation2 + $0xb0] sm:$0x1] %vm1410_vm10, %v1392_v4  ;;  %1424 = vst.msk [vmem:[#allocation2 + $0xd0] sm:$0x1] %vm1410_vm10, %v1389_v1  ;;  %v1344_v23 = vcombine.high %v1340_v61, %v1340_v61  ;;  %v1603_v36 = vcombine.high %v1592_v22, %v1592_v22  ;;  %v1610_v27 = vrot.slane %v1592_v22, %v5906_v44 }
 0x1db   :  { %1425 = vst.msk [vmem:[#allocation2 + $0xe0] sm:$0x1] %vm1410_vm10, %v1391_v2  ;;  %1414 = vst.msk [vmem:[#allocation2 + $0x30] sm:$0x1] %vm1410_vm10, %v1343_v62  ;;  %v1666_v28 = vrot.slane %v1652_v59, %v5906_v44  ;;  %v1667_v31 = vcombine.high %v1659_v60, %v1659_v60  ;;  %v1675_v32 = vrot.slane %v1659_v60, %v5906_v44 }
 0x1dc   :  { %1416 = vst.msk [vmem:[#allocation2 + $0x50] sm:$0x1] %vm1410_vm10, %v1340_v61  ;;  %1417 = vst.msk [vmem:[#allocation2 + $0x60] sm:$0x1] %vm1410_vm10, %v1342_v5  ;;  %v1617_v33 = vrot.slane %v1603_v36, %v5906_v44  ;;  %v1618_v34 = vcombine.high %v1610_v27, %v1610_v27  ;;  %v1626_v35 = vrot.slane %v1610_v27, %v5906_v44 }
 0x1dd   :  { %1426 = vst.msk [vmem:[#allocation2 + $0xf0] sm:$0x1] %vm1410_vm10, %v1393_v9  ;;  %1418 = vst.msk [vmem:[#allocation2 + $0x70] sm:$0x1] %vm1410_vm10, %v1344_v23  ;;  %v1668_v18 = vcombine.high %v1666_v28, %v1666_v28  ;;  %v1682_v19 = vrot.slane %v1666_v28, %v5906_v44  ;;  %v1689_v7 = vrot.slane %v1667_v31, %v5906_v44 }
 0x1de   :  { %v1697_v47 = vcombine.high %v1675_v32, %v1675_v32  ;;  %1725 = vst.msk [vmem:[#allocation2 + $0x81] sm:$0x1] %vm1410_vm10, %v1675_v32  ;;  %v1619_v40 = vcombine.high %v1617_v33, %v1617_v33  ;;  %v1633_v48 = vrot.slane %v1617_v33, %v5906_v44  ;;  %v1640_v55 = vrot.slane %v1618_v34, %v5906_v44 }
 0x1df   :  { %v1648_v37 = vcombine.high %v1626_v35, %v1626_v35  ;;  %1717 = vst.msk [vmem:[#allocation2 + $0x1] sm:$0x1] %vm1410_vm10, %v1626_v35  ;;  %v1696_v38 = vrot.slane %v1668_v18, %v5906_v44  ;;  %v1698_v42 = vcombine.high %v1682_v19, %v1682_v19  ;;  %v1699_v16 = vcombine.high %v1689_v7, %v1689_v7 }
 0x1e0   :  { %1726 = vst.msk [vmem:[#allocation2 + $0x91] sm:$0x1] %vm1410_vm10, %v1689_v7  ;;  %1727 = vst.msk [vmem:[#allocation2 + $0xa1] sm:$0x1] %vm1410_vm10, %v1697_v47  ;;  %v1647_v17 = vrot.slane %v1619_v40, %v5906_v44  ;;  %v1649_v49 = vcombine.high %v1633_v48, %v1633_v48  ;;  %v1650_v50 = vcombine.high %v1640_v55, %v1640_v55  ;;  %v4653_v10 = vpop.f32.mrb[12].mxu0 }
 0x1e1   :  { %1729 = vst.msk [vmem:[#allocation2 + $0xc1] sm:$0x1] %vm1410_vm10, %v1682_v19  ;;  %1718 = vst.msk [vmem:[#allocation2 + $0x11] sm:$0x1] %vm1410_vm10, %v1640_v55  ;;  %v1700_v8 = vcombine.high %v1696_v38, %v1696_v38  ;;  %v1958_v3 = vcombine.high %v4653_v10, %v4653_v10  ;;  %v1965_v46 = vrot.slane %v4653_v10, %v5906_v44  ;;  %v1898_v51 = vpop.f32.mrb[13].mxu0 }
 0x1e2   :  { %1719 = vst.msk [vmem:[#allocation2 + $0x21] sm:$0x1] %vm1410_vm10, %v1648_v37  ;;  %1721 = vst.msk [vmem:[#allocation2 + $0x41] sm:$0x1] %vm1410_vm10, %v1633_v48  ;;  %v1651_v12 = vcombine.high %v1647_v17, %v1647_v17  ;;  %v1909_v39 = vcombine.high %v1898_v51, %v1898_v51  ;;  %v1916_v41 = vrot.slane %v1898_v51, %v5906_v44 }
 0x1e3   :  { %1728 = vst.msk [vmem:[#allocation2 + $0xb1] sm:$0x1] %vm1410_vm10, %v1699_v16  ;;  %1730 = vst.msk [vmem:[#allocation2 + $0xd1] sm:$0x1] %vm1410_vm10, %v1696_v38  ;;  %v1972_v43 = vrot.slane %v1958_v3, %v5906_v44  ;;  %v1973_v45 = vcombine.high %v1965_v46, %v1965_v46  ;;  %v1981_v11 = vrot.slane %v1965_v46, %v5906_v44 }
 0x1e4   :  { %1731 = vst.msk [vmem:[#allocation2 + $0xe1] sm:$0x1] %vm1410_vm10, %v1698_v42  ;;  %1720 = vst.msk [vmem:[#allocation2 + $0x31] sm:$0x1] %vm1410_vm10, %v1650_v50  ;;  %v1923_v13 = vrot.slane %v1909_v39, %v5906_v44  ;;  %v1924_v54 = vcombine.high %v1916_v41, %v1916_v41  ;;  %v1932_v14 = vrot.slane %v1916_v41, %v5906_v44 }
 0x1e5   :  { %1722 = vst.msk [vmem:[#allocation2 + $0x51] sm:$0x1] %vm1410_vm10, %v1647_v17  ;;  %1723 = vst.msk [vmem:[#allocation2 + $0x61] sm:$0x1] %vm1410_vm10, %v1649_v49  ;;  %v1974_v20 = vcombine.high %v1972_v43, %v1972_v43  ;;  %v1988_v15 = vrot.slane %v1972_v43, %v5906_v44  ;;  %v1995_v21 = vrot.slane %v1973_v45, %v5906_v44 }
 0x1e6   :  { %1732 = vst.msk [vmem:[#allocation2 + $0xf1] sm:$0x1] %vm1410_vm10, %v1700_v8  ;;  %1724 = vst.msk [vmem:[#allocation2 + $0x71] sm:$0x1] %vm1410_vm10, %v1651_v12  ;;  %v2003_v24 = vcombine.high %v1981_v11, %v1981_v11  ;;  %v1925_v25 = vcombine.high %v1923_v13, %v1923_v13  ;;  %v1939_v26 = vrot.slane %v1923_v13, %v5906_v44 }
 0x1e7   :  { %2031 = vst.msk [vmem:[#allocation2 + $0x82] sm:$0x1] %vm1410_vm10, %v1981_v11  ;;  %v1946_v29 = vrot.slane %v1924_v54, %v5906_v44  ;;  %v1954_v30 = vcombine.high %v1932_v14, %v1932_v14  ;;  %2023 = vst.msk [vmem:[#allocation2 + $0x2] sm:$0x1] %vm1410_vm10, %v1932_v14  ;;  %v2002_v52 = vrot.slane %v1974_v20, %v5906_v44 }
 0x1e8   :  { %v2004_v57 = vcombine.high %v1988_v15, %v1988_v15  ;;  %v2005_v58 = vcombine.high %v1995_v21, %v1995_v21  ;;  %2032 = vst.msk [vmem:[#allocation2 + $0x92] sm:$0x1] %vm1410_vm10, %v1995_v21  ;;  %2033 = vst.msk [vmem:[#allocation2 + $0xa2] sm:$0x1] %vm1410_vm10, %v2003_v24  ;;  %v1953_v56 = vrot.slane %v1925_v25, %v5906_v44  ;;  %v4671_v0 = vpop.f32.mrb[12].mxu1 }
 0x1e9   :  { %2035 = vst.msk [vmem:[#allocation2 + $0xc2] sm:$0x1] %vm1410_vm10, %v1988_v15  ;;  %v1955_v53 = vcombine.high %v1939_v26, %v1939_v26  ;;  %v1956_v63 = vcombine.high %v1946_v29, %v1946_v29  ;;  %2024 = vst.msk [vmem:[#allocation2 + $0x12] sm:$0x1] %vm1410_vm10, %v1946_v29  ;;  %v2006_v1 = vcombine.high %v2002_v52, %v2002_v52  ;;  %v2204_v61 = vpop.f32.mrb[13].mxu1 }
 0x1ea   :  { %2025 = vst.msk [vmem:[#allocation2 + $0x22] sm:$0x1] %vm1410_vm10, %v1954_v30  ;;  %2027 = vst.msk [vmem:[#allocation2 + $0x42] sm:$0x1] %vm1410_vm10, %v1939_v26  ;;  %v2264_v2 = vcombine.high %v4671_v0, %v4671_v0  ;;  %v2271_v4 = vrot.slane %v4671_v0, %v5906_v44  ;;  %v1957_v5 = vcombine.high %v1953_v56, %v1953_v56 }
 0x1eb   :  { %2034 = vst.msk [vmem:[#allocation2 + $0xb2] sm:$0x1] %vm1410_vm10, %v2005_v58  ;;  %2036 = vst.msk [vmem:[#allocation2 + $0xd2] sm:$0x1] %vm1410_vm10, %v2002_v52  ;;  %v2215_v62 = vcombine.high %v2204_v61, %v2204_v61  ;;  %v2222_v6 = vrot.slane %v2204_v61, %v5906_v44 }
 0x1ec   :  { %2037 = vst.msk [vmem:[#allocation2 + $0xe2] sm:$0x1] %vm1410_vm10, %v2004_v57  ;;  %2026 = vst.msk [vmem:[#allocation2 + $0x32] sm:$0x1] %vm1410_vm10, %v1956_v63  ;;  %v2278_v9 = vrot.slane %v2264_v2, %v5906_v44  ;;  %v2279_v59 = vcombine.high %v2271_v4, %v2271_v4  ;;  %v2287_v60 = vrot.slane %v2271_v4, %v5906_v44 }
 0x1ed   :  { %2028 = vst.msk [vmem:[#allocation2 + $0x52] sm:$0x1] %vm1410_vm10, %v1953_v56  ;;  %2029 = vst.msk [vmem:[#allocation2 + $0x62] sm:$0x1] %vm1410_vm10, %v1955_v53  ;;  %v2229_v22 = vrot.slane %v2215_v62, %v5906_v44  ;;  %v2230_v23 = vcombine.high %v2222_v6, %v2222_v6  ;;  %v2238_v36 = vrot.slane %v2222_v6, %v5906_v44 }
 0x1ee   :  { %2038 = vst.msk [vmem:[#allocation2 + $0xf2] sm:$0x1] %vm1410_vm10, %v2006_v1  ;;  %2030 = vst.msk [vmem:[#allocation2 + $0x72] sm:$0x1] %vm1410_vm10, %v1957_v5  ;;  %v2280_v27 = vcombine.high %v2278_v9, %v2278_v9  ;;  %v2294_v28 = vrot.slane %v2278_v9, %v5906_v44  ;;  %v2301_v31 = vrot.slane %v2279_v59, %v5906_v44  ;;  %v4689_v19 = vpop.f32.mrb[14].mxu0 }
 0x1ef   :  { %v2309_v32 = vcombine.high %v2287_v60, %v2287_v60  ;;  %2337 = vst.msk [vmem:[#allocation2 + $0x83] sm:$0x1] %vm1410_vm10, %v2287_v60  ;;  %v2231_v33 = vcombine.high %v2229_v22, %v2229_v22  ;;  %v2245_v34 = vrot.slane %v2229_v22, %v5906_v44  ;;  %v2252_v35 = vrot.slane %v2230_v23, %v5906_v44  ;;  %v2510_v55 = vpop.f32.mrb[15].mxu0 }
 0x1f0   :  { %v2260_v18 = vcombine.high %v2238_v36, %v2238_v36  ;;  %2329 = vst.msk [vmem:[#allocation2 + $0x3] sm:$0x1] %vm1410_vm10, %v2238_v36  ;;  %v2308_v7 = vrot.slane %v2280_v27, %v5906_v44  ;;  %v2310_v47 = vcombine.high %v2294_v28, %v2294_v28  ;;  %v2311_v40 = vcombine.high %v2301_v31, %v2301_v31 }
 0x1f1   :  { %2338 = vst.msk [vmem:[#allocation2 + $0x93] sm:$0x1] %vm1410_vm10, %v2301_v31  ;;  %2339 = vst.msk [vmem:[#allocation2 + $0xa3] sm:$0x1] %vm1410_vm10, %v2309_v32  ;;  %v2570_v48 = vcombine.high %v4689_v19, %v4689_v19  ;;  %v2259_v37 = vrot.slane %v2231_v33, %v5906_v44  ;;  %v2261_v38 = vcombine.high %v2245_v34, %v2245_v34 }
 0x1f2   :  { %2341 = vst.msk [vmem:[#allocation2 + $0xc3] sm:$0x1] %vm1410_vm10, %v2294_v28  ;;  %v2262_v42 = vcombine.high %v2252_v35, %v2252_v35  ;;  %2330 = vst.msk [vmem:[#allocation2 + $0x13] sm:$0x1] %vm1410_vm10, %v2252_v35  ;;  %v2577_v16 = vrot.slane %v4689_v19, %v5906_v44  ;;  %v2312_v17 = vcombine.high %v2308_v7, %v2308_v7 }
 0x1f3   :  { %2331 = vst.msk [vmem:[#allocation2 + $0x23] sm:$0x1] %vm1410_vm10, %v2260_v18  ;;  %2333 = vst.msk [vmem:[#allocation2 + $0x43] sm:$0x1] %vm1410_vm10, %v2245_v34  ;;  %v2584_v49 = vrot.slane %v2570_v48, %v5906_v44  ;;  %v2521_v50 = vcombine.high %v2510_v55, %v2510_v55  ;;  %v2528_v10 = vrot.slane %v2510_v55, %v5906_v44 }
 0x1f4   :  { %2340 = vst.msk [vmem:[#allocation2 + $0xb3] sm:$0x1] %vm1410_vm10, %v2311_v40  ;;  %2342 = vst.msk [vmem:[#allocation2 + $0xd3] sm:$0x1] %vm1410_vm10, %v2308_v7  ;;  %v2263_v8 = vcombine.high %v2259_v37, %v2259_v37  ;;  %v2585_v3 = vcombine.high %v2577_v16, %v2577_v16  ;;  %v2593_v46 = vrot.slane %v2577_v16, %v5906_v44 }
 0x1f5   :  { %2343 = vst.msk [vmem:[#allocation2 + $0xe3] sm:$0x1] %vm1410_vm10, %v2310_v47  ;;  %2332 = vst.msk [vmem:[#allocation2 + $0x33] sm:$0x1] %vm1410_vm10, %v2262_v42  ;;  %v2586_v51 = vcombine.high %v2584_v49, %v2584_v49  ;;  %v2600_v12 = vrot.slane %v2584_v49, %v5906_v44  ;;  %v2535_v39 = vrot.slane %v2521_v50, %v5906_v44 }
 0x1f6   :  { %2334 = vst.msk [vmem:[#allocation2 + $0x53] sm:$0x1] %vm1410_vm10, %v2259_v37  ;;  %2335 = vst.msk [vmem:[#allocation2 + $0x63] sm:$0x1] %vm1410_vm10, %v2261_v38  ;;  %v2536_v41 = vcombine.high %v2528_v10, %v2528_v10  ;;  %v2607_v43 = vrot.slane %v2585_v3, %v5906_v44  ;;  %v2615_v45 = vcombine.high %v2593_v46, %v2593_v46 }
 0x1f7   :  { %2344 = vst.msk [vmem:[#allocation2 + $0xf3] sm:$0x1] %vm1410_vm10, %v2312_v17  ;;  %2336 = vst.msk [vmem:[#allocation2 + $0x73] sm:$0x1] %vm1410_vm10, %v2263_v8  ;;  %v2544_v11 = vrot.slane %v2528_v10, %v5906_v44  ;;  %v2614_v13 = vrot.slane %v2586_v51, %v5906_v44  ;;  %v2616_v54 = vcombine.high %v2600_v12, %v2600_v12  ;;  %v4707_v30 = vpop.f32.mrb[14].mxu1 }
 0x1f8   :  { %2643 = vst.msk [vmem:[#allocation2 + $0x84] sm:$0x1] %vm1410_vm10, %v2593_v46  ;;  %2647 = vst.msk [vmem:[#allocation2 + $0xc4] sm:$0x1] %vm1410_vm10, %v2600_v12  ;;  %v2537_v14 = vcombine.high %v2535_v39, %v2535_v39  ;;  %v2551_v20 = vrot.slane %v2535_v39, %v5906_v44  ;;  %v2617_v15 = vcombine.high %v2607_v43, %v2607_v43  ;;  %v2816_v56 = vpop.f32.mrb[15].mxu1 }
 0x1f9   :  { %2644 = vst.msk [vmem:[#allocation2 + $0x94] sm:$0x1] %vm1410_vm10, %v2607_v43  ;;  %2645 = vst.msk [vmem:[#allocation2 + $0xa4] sm:$0x1] %vm1410_vm10, %v2615_v45  ;;  %v2558_v21 = vrot.slane %v2536_v41, %v5906_v44  ;;  %v2566_v24 = vcombine.high %v2544_v11, %v2544_v11  ;;  %v2618_v25 = vcombine.high %v2614_v13, %v2614_v13 }
 0x1fa   :  { %2635 = vst.msk [vmem:[#allocation2 + $0x4] sm:$0x1] %vm1410_vm10, %v2544_v11  ;;  %2648 = vst.msk [vmem:[#allocation2 + $0xd4] sm:$0x1] %vm1410_vm10, %v2614_v13  ;;  %v2565_v26 = vrot.slane %v2537_v14, %v5906_v44  ;;  %v2567_v29 = vcombine.high %v2551_v20, %v2551_v20  ;;  %v2876_v57 = vcombine.high %v4707_v30, %v4707_v30 }
 0x1fb   :  { %2649 = vst.msk [vmem:[#allocation2 + $0xe4] sm:$0x1] %vm1410_vm10, %v2616_v54  ;;  %2639 = vst.msk [vmem:[#allocation2 + $0x44] sm:$0x1] %vm1410_vm10, %v2551_v20  ;;  %v2568_v52 = vcombine.high %v2558_v21, %v2558_v21  ;;  %v2883_v58 = vrot.slane %v4707_v30, %v5906_v44  ;;  %v2827_v63 = vcombine.high %v2816_v56, %v2816_v56 }
 0x1fc   :  { %2646 = vst.msk [vmem:[#allocation2 + $0xb4] sm:$0x1] %vm1410_vm10, %v2617_v15  ;;  %2636 = vst.msk [vmem:[#allocation2 + $0x14] sm:$0x1] %vm1410_vm10, %v2558_v21  ;;  %v2569_v53 = vcombine.high %v2565_v26, %v2565_v26  ;;  %v2834_v0 = vrot.slane %v2816_v56, %v5906_v44  ;;  %v2890_v1 = vrot.slane %v2876_v57, %v5906_v44  ;;  %v4725_v22 = vpop.f32.mrb[16].mxu0 }
 0x1fd   :  { %2637 = vst.msk [vmem:[#allocation2 + $0x24] sm:$0x1] %vm1410_vm10, %v2566_v24  ;;  %2650 = vst.msk [vmem:[#allocation2 + $0xf4] sm:$0x1] %vm1410_vm10, %v2618_v25  ;;  %v2891_v2 = vcombine.high %v2883_v58, %v2883_v58  ;;  %v2899_v4 = vrot.slane %v2883_v58, %v5906_v44  ;;  %v2841_v61 = vrot.slane %v2827_v63, %v5906_v44  ;;  %v3122_v31 = vpop.f32.mrb[17].mxu0 }
 0x1fe   :  { %2640 = vst.msk [vmem:[#allocation2 + $0x54] sm:$0x1] %vm1410_vm10, %v2565_v26  ;;  %2641 = vst.msk [vmem:[#allocation2 + $0x64] sm:$0x1] %vm1410_vm10, %v2567_v29  ;;  %v2842_v5 = vcombine.high %v2834_v0, %v2834_v0  ;;  %v2850_v62 = vrot.slane %v2834_v0, %v5906_v44  ;;  %v2892_v6 = vcombine.high %v2890_v1, %v2890_v1 }
 0x1ff   :  { %2638 = vst.msk [vmem:[#allocation2 + $0x34] sm:$0x1] %vm1410_vm10, %v2568_v52  ;;  %2642 = vst.msk [vmem:[#allocation2 + $0x74] sm:$0x1] %vm1410_vm10, %v2569_v53  ;;  %v2906_v9 = vrot.slane %v2890_v1, %v5906_v44  ;;  %v2913_v59 = vrot.slane %v2891_v2, %v5906_v44  ;;  %v2921_v60 = vcombine.high %v2899_v4, %v2899_v4 }
 0x200   :  { %2949 = vst.msk [vmem:[#allocation2 + $0x85] sm:$0x1] %vm1410_vm10, %v2899_v4  ;;  %v2843_v23 = vcombine.high %v2841_v61, %v2841_v61  ;;  %v2857_v36 = vrot.slane %v2841_v61, %v5906_v44  ;;  %v2864_v27 = vrot.slane %v2842_v5, %v5906_v44  ;;  %v2872_v28 = vcombine.high %v2850_v62, %v2850_v62 }
 0x201   :  { %2941 = vst.msk [vmem:[#allocation2 + $0x5] sm:$0x1] %vm1410_vm10, %v2850_v62  ;;  %v2920_v32 = vrot.slane %v2892_v6, %v5906_v44  ;;  %v2922_v33 = vcombine.high %v2906_v9, %v2906_v9  ;;  %v2923_v34 = vcombine.high %v2913_v59, %v2913_v59  ;;  %2950 = vst.msk [vmem:[#allocation2 + $0x95] sm:$0x1] %vm1410_vm10, %v2913_v59 }
 0x202   :  { %2951 = vst.msk [vmem:[#allocation2 + $0xa5] sm:$0x1] %vm1410_vm10, %v2921_v60  ;;  %2953 = vst.msk [vmem:[#allocation2 + $0xc5] sm:$0x1] %vm1410_vm10, %v2906_v9  ;;  %v3182_v35 = vcombine.high %v4725_v22, %v4725_v22  ;;  %v2871_v18 = vrot.slane %v2843_v23, %v5906_v44  ;;  %v2873_v19 = vcombine.high %v2857_v36, %v2857_v36 }
 0x203   :  { %v2874_v7 = vcombine.high %v2864_v27, %v2864_v27  ;;  %2942 = vst.msk [vmem:[#allocation2 + $0x15] sm:$0x1] %vm1410_vm10, %v2864_v27  ;;  %2943 = vst.msk [vmem:[#allocation2 + $0x25] sm:$0x1] %vm1410_vm10, %v2872_v28  ;;  %v3189_v47 = vrot.slane %v4725_v22, %v5906_v44  ;;  %v2924_v40 = vcombine.high %v2920_v32, %v2920_v32 }
 0x204   :  { %2945 = vst.msk [vmem:[#allocation2 + $0x45] sm:$0x1] %vm1410_vm10, %v2857_v36  ;;  %2952 = vst.msk [vmem:[#allocation2 + $0xb5] sm:$0x1] %vm1410_vm10, %v2923_v34  ;;  %v3196_v48 = vrot.slane %v3182_v35, %v5906_v44  ;;  %v3133_v55 = vcombine.high %v3122_v31, %v3122_v31  ;;  %v3140_v37 = vrot.slane %v3122_v31, %v5906_v44 }
 0x205   :  { %2954 = vst.msk [vmem:[#allocation2 + $0xd5] sm:$0x1] %vm1410_vm10, %v2920_v32  ;;  %2955 = vst.msk [vmem:[#allocation2 + $0xe5] sm:$0x1] %vm1410_vm10, %v2922_v33  ;;  %v2875_v38 = vcombine.high %v2871_v18, %v2871_v18  ;;  %v3197_v42 = vcombine.high %v3189_v47, %v3189_v47  ;;  %v3205_v16 = vrot.slane %v3189_v47, %v5906_v44  ;;  %v4743_v13 = vpop.f32.mrb[16].mxu1 }
 0x206   :  { %2944 = vst.msk [vmem:[#allocation2 + $0x35] sm:$0x1] %vm1410_vm10, %v2874_v7  ;;  %2946 = vst.msk [vmem:[#allocation2 + $0x55] sm:$0x1] %vm1410_vm10, %v2871_v18  ;;  %v3198_v17 = vcombine.high %v3196_v48, %v3196_v48  ;;  %v3212_v49 = vrot.slane %v3196_v48, %v5906_v44  ;;  %v3147_v50 = vrot.slane %v3133_v55, %v5906_v44  ;;  %v3428_v21 = vpop.f32.mrb[17].mxu1 }
 0x207   :  { %2947 = vst.msk [vmem:[#allocation2 + $0x65] sm:$0x1] %vm1410_vm10, %v2873_v19  ;;  %2956 = vst.msk [vmem:[#allocation2 + $0xf5] sm:$0x1] %vm1410_vm10, %v2924_v40  ;;  %v3148_v10 = vcombine.high %v3140_v37, %v3140_v37  ;;  %v3219_v8 = vrot.slane %v3197_v42, %v5906_v44  ;;  %v3227_v3 = vcombine.high %v3205_v16, %v3205_v16 }
 0x208   :  { %2948 = vst.msk [vmem:[#allocation2 + $0x75] sm:$0x1] %vm1410_vm10, %v2875_v38  ;;  %3255 = vst.msk [vmem:[#allocation2 + $0x86] sm:$0x1] %vm1410_vm10, %v3205_v16  ;;  %v3156_v46 = vrot.slane %v3140_v37, %v5906_v44  ;;  %v3226_v51 = vrot.slane %v3198_v17, %v5906_v44  ;;  %v3228_v12 = vcombine.high %v3212_v49, %v3212_v49 }
 0x209   :  { %3259 = vst.msk [vmem:[#allocation2 + $0xc6] sm:$0x1] %vm1410_vm10, %v3212_v49  ;;  %v3149_v39 = vcombine.high %v3147_v50, %v3147_v50  ;;  %v3163_v41 = vrot.slane %v3147_v50, %v5906_v44  ;;  %v3229_v43 = vcombine.high %v3219_v8, %v3219_v8  ;;  %3256 = vst.msk [vmem:[#allocation2 + $0x96] sm:$0x1] %vm1410_vm10, %v3219_v8 }
 0x20a   :  { %3257 = vst.msk [vmem:[#allocation2 + $0xa6] sm:$0x1] %vm1410_vm10, %v3227_v3  ;;  %v3170_v45 = vrot.slane %v3148_v10, %v5906_v44  ;;  %v3178_v11 = vcombine.high %v3156_v46, %v3156_v46  ;;  %3247 = vst.msk [vmem:[#allocation2 + $0x6] sm:$0x1] %vm1410_vm10, %v3156_v46  ;;  %v3230_v54 = vcombine.high %v3226_v51, %v3226_v51 }
 0x20b   :  { %3260 = vst.msk [vmem:[#allocation2 + $0xd6] sm:$0x1] %vm1410_vm10, %v3226_v51  ;;  %3261 = vst.msk [vmem:[#allocation2 + $0xe6] sm:$0x1] %vm1410_vm10, %v3228_v12  ;;  %v3177_v14 = vrot.slane %v3149_v39, %v5906_v44  ;;  %v3179_v20 = vcombine.high %v3163_v41, %v3163_v41  ;;  %v3488_v15 = vcombine.high %v4743_v13, %v4743_v13  ;;  %v4761_v62 = vpop.f32.mrb[18].mxu0 }
 0x20c   :  { %3251 = vst.msk [vmem:[#allocation2 + $0x46] sm:$0x1] %vm1410_vm10, %v3163_v41  ;;  %3258 = vst.msk [vmem:[#allocation2 + $0xb6] sm:$0x1] %vm1410_vm10, %v3229_v43  ;;  %v3180_v24 = vcombine.high %v3170_v45, %v3170_v45  ;;  %v3495_v25 = vrot.slane %v4743_v13, %v5906_v44  ;;  %v3439_v26 = vcombine.high %v3428_v21, %v3428_v21  ;;  %v3734_v22 = vpop.f32.mrb[19].mxu0 }
 0x20d   :  { %3248 = vst.msk [vmem:[#allocation2 + $0x16] sm:$0x1] %vm1410_vm10, %v3170_v45  ;;  %3249 = vst.msk [vmem:[#allocation2 + $0x26] sm:$0x1] %vm1410_vm10, %v3178_v11  ;;  %v3446_v29 = vrot.slane %v3428_v21, %v5906_v44  ;;  %v3181_v30 = vcombine.high %v3177_v14, %v3177_v14  ;;  %v3502_v52 = vrot.slane %v3488_v15, %v5906_v44 }
 0x20e   :  { %3262 = vst.msk [vmem:[#allocation2 + $0xf6] sm:$0x1] %vm1410_vm10, %v3230_v54  ;;  %3252 = vst.msk [vmem:[#allocation2 + $0x56] sm:$0x1] %vm1410_vm10, %v3177_v14  ;;  %v3503_v57 = vcombine.high %v3495_v25, %v3495_v25  ;;  %v3511_v58 = vrot.slane %v3495_v25, %v5906_v44  ;;  %v3453_v56 = vrot.slane %v3439_v26, %v5906_v44 }
 0x20f   :  { %3253 = vst.msk [vmem:[#allocation2 + $0x66] sm:$0x1] %vm1410_vm10, %v3179_v20  ;;  %3250 = vst.msk [vmem:[#allocation2 + $0x36] sm:$0x1] %vm1410_vm10, %v3180_v24  ;;  %v3454_v53 = vcombine.high %v3446_v29, %v3446_v29  ;;  %v3504_v63 = vcombine.high %v3502_v52, %v3502_v52  ;;  %v3518_v0 = vrot.slane %v3502_v52, %v5906_v44 }
 0x210   :  { %3254 = vst.msk [vmem:[#allocation2 + $0x76] sm:$0x1] %vm1410_vm10, %v3181_v30  ;;  %v3462_v1 = vrot.slane %v3446_v29, %v5906_v44  ;;  %v3525_v2 = vrot.slane %v3503_v57, %v5906_v44  ;;  %v3533_v4 = vcombine.high %v3511_v58, %v3511_v58  ;;  %3561 = vst.msk [vmem:[#allocation2 + $0x87] sm:$0x1] %vm1410_vm10, %v3511_v58 }
 0x211   :  { %v3455_v61 = vcombine.high %v3453_v56, %v3453_v56  ;;  %v3469_v5 = vrot.slane %v3453_v56, %v5906_v44  ;;  %v3532_v6 = vrot.slane %v3504_v63, %v5906_v44  ;;  %v3534_v9 = vcombine.high %v3518_v0, %v3518_v0  ;;  %3565 = vst.msk [vmem:[#allocation2 + $0xc7] sm:$0x1] %vm1410_vm10, %v3518_v0 }
 0x212   :  { %v3476_v59 = vrot.slane %v3454_v53, %v5906_v44  ;;  %v3484_v60 = vcombine.high %v3462_v1, %v3462_v1  ;;  %3553 = vst.msk [vmem:[#allocation2 + $0x7] sm:$0x1] %vm1410_vm10, %v3462_v1  ;;  %v3535_v23 = vcombine.high %v3525_v2, %v3525_v2  ;;  %3562 = vst.msk [vmem:[#allocation2 + $0x97] sm:$0x1] %vm1410_vm10, %v3525_v2 }
 0x213   :  { %3563 = vst.msk [vmem:[#allocation2 + $0xa7] sm:$0x1] %vm1410_vm10, %v3533_v4  ;;  %v3483_v36 = vrot.slane %v3455_v61, %v5906_v44  ;;  %v3485_v27 = vcombine.high %v3469_v5, %v3469_v5  ;;  %3557 = vst.msk [vmem:[#allocation2 + $0x47] sm:$0x1] %vm1410_vm10, %v3469_v5  ;;  %v3794_v28 = vcombine.high %v4761_v62, %v4761_v62  ;;  %v4779_v39 = vpop.f32.mrb[18].mxu1 }
 0x214   :  { %v3536_v31 = vcombine.high %v3532_v6, %v3532_v6  ;;  %3566 = vst.msk [vmem:[#allocation2 + $0xd7] sm:$0x1] %vm1410_vm10, %v3532_v6  ;;  %3567 = vst.msk [vmem:[#allocation2 + $0xe7] sm:$0x1] %vm1410_vm10, %v3534_v9  ;;  %v3486_v32 = vcombine.high %v3476_v59, %v3476_v59  ;;  %v3801_v33 = vrot.slane %v4761_v62, %v5906_v44  ;;  %v4040_v20 = vpop.f32.mrb[19].mxu1 }
 0x215   :  { %3554 = vst.msk [vmem:[#allocation2 + $0x17] sm:$0x1] %vm1410_vm10, %v3476_v59  ;;  %3555 = vst.msk [vmem:[#allocation2 + $0x27] sm:$0x1] %vm1410_vm10, %v3484_v60  ;;  %v3745_v34 = vcombine.high %v3734_v22, %v3734_v22  ;;  %v3487_v35 = vcombine.high %v3483_v36, %v3483_v36  ;;  %v3808_v18 = vrot.slane %v3794_v28, %v5906_v44 }
 0x216   :  { %3564 = vst.msk [vmem:[#allocation2 + $0xb7] sm:$0x1] %vm1410_vm10, %v3535_v23  ;;  %3558 = vst.msk [vmem:[#allocation2 + $0x57] sm:$0x1] %vm1410_vm10, %v3483_v36  ;;  %v3752_v19 = vrot.slane %v3734_v22, %v5906_v44  ;;  %v3809_v7 = vcombine.high %v3801_v33, %v3801_v33  ;;  %v3817_v47 = vrot.slane %v3801_v33, %v5906_v44 }
 0x217   :  { %3559 = vst.msk [vmem:[#allocation2 + $0x67] sm:$0x1] %vm1410_vm10, %v3485_v27  ;;  %3568 = vst.msk [vmem:[#allocation2 + $0xf7] sm:$0x1] %vm1410_vm10, %v3536_v31  ;;  %v3759_v40 = vrot.slane %v3745_v34, %v5906_v44  ;;  %v3810_v48 = vcombine.high %v3808_v18, %v3808_v18  ;;  %v3824_v55 = vrot.slane %v3808_v18, %v5906_v44  ;;  %v4197_v42 = vld [vmem:[#allocation2 + $0x80] sm:$0xff] }
 0x218   :  { %3556 = vst.msk [vmem:[#allocation2 + $0x37] sm:$0x1] %vm1410_vm10, %v3486_v32  ;;  %3560 = vst.msk [vmem:[#allocation2 + $0x77] sm:$0x1] %vm1410_vm10, %v3487_v35  ;;  %v3760_v37 = vcombine.high %v3752_v19, %v3752_v19  ;;  %v3768_v38 = vrot.slane %v3752_v19, %v5906_v44  ;;  %v3831_v16 = vrot.slane %v3809_v7, %v5906_v44  ;;  %v4205_v10 = vld [vmem:[#allocation2 + $0xc0] sm:$0xff] }
 0x219   :  { %v3839_v17 = vcombine.high %v3817_v47, %v3817_v47  ;;  %3867 = vst.msk [vmem:[#allocation2 + $0x88] sm:$0x1] %vm1410_vm10, %v3817_v47  ;;  %v3761_v49 = vcombine.high %v3759_v40, %v3759_v40  ;;  %v3775_v50 = vrot.slane %v3759_v40, %v5906_v44  ;;  %v4181_v8 = vld [vmem:[#allocation2] sm:$0xff]  ;;  %v3838_v3 = vrot.slane %v3810_v48, %v5906_v44  ;;  %v4199_v41 = vld [vmem:[#allocation2 + $0x90] sm:$0xff] }
 0x21a   :  { %4230 = vst.msk [vmem:[%s6321_s5 + $0x80] sm:$0xff] %vm101_vm7, %v4197_v42  ;;  %v3840_v46 = vcombine.high %v3824_v55, %v3824_v55  ;;  %v3782_v51 = vrot.slane %v3760_v37, %v5906_v44  ;;  %v3790_v12 = vcombine.high %v3768_v38, %v3768_v38  ;;  %v4201_v43 = vld [vmem:[#allocation2 + $0xa0] sm:$0xff]  ;;  %4238 = vst.msk [vmem:[%s6321_s5 + $0xc0] sm:$0xff] %vm101_vm7, %v4205_v10 }
 0x21b   :  { %3871 = vst.msk [vmem:[#allocation2 + $0xc8] sm:$0x1] %vm1410_vm10, %v3824_v55  ;;  %3859 = vst.msk [vmem:[#allocation2 + $0x8] sm:$0x1] %vm1410_vm10, %v3768_v38  ;;  %v4189_v45 = vld [vmem:[#allocation2 + $0x40] sm:$0xff]  ;;  %v3841_v11 = vcombine.high %v3831_v16, %v3831_v16  ;;  %v3789_v13 = vrot.slane %v3761_v49, %v5906_v44  ;;  %v3791_v54 = vcombine.high %v3775_v50, %v3775_v50  ;;  %v4207_v15 = vld [vmem:[#allocation2 + $0xd0] sm:$0xff] }
 0x21c   :  { %4213 = vst.msk [vmem:[%s6321_s5] sm:$0xff] %vm101_vm7, %v4181_v8  ;;  %v4100_v14 = vcombine.high %v4779_v39, %v4779_v39  ;;  %v4209_v21 = vld [vmem:[#allocation2 + $0xe0] sm:$0xff]  ;;  %4232 = vst.msk [vmem:[%s6321_s5 + $0x90] sm:$0xff] %vm101_vm7, %v4199_v41  ;;  %v4183_v24 = vld [vmem:[#allocation2 + $0x10] sm:$0xff]  ;;  %v3842_v25 = vcombine.high %v3838_v3, %v3838_v3  ;;  %v3792_v26 = vcombine.high %v3782_v51, %v3782_v51 }
 0x21d   :  { %3868 = vst.msk [vmem:[#allocation2 + $0x98] sm:$0x1] %vm1410_vm10, %v3831_v16  ;;  %3869 = vst.msk [vmem:[#allocation2 + $0xa8] sm:$0x1] %vm1410_vm10, %v3839_v17  ;;  %v4107_v29 = vrot.slane %v4779_v39, %v5906_v44  ;;  %v4051_v30 = vcombine.high %v4040_v20, %v4040_v20  ;;  %v4203_v52 = vld [vmem:[#allocation2 + $0xb0] sm:$0xff]  ;;  %v4185_v57 = vld [vmem:[#allocation2 + $0x20] sm:$0xff]  ;;  %v3793_v56 = vcombine.high %v3789_v13, %v3789_v13 }
 0x21e   :  { %3863 = vst.msk [vmem:[#allocation2 + $0x48] sm:$0x1] %vm1410_vm10, %v3775_v50  ;;  %3872 = vst.msk [vmem:[#allocation2 + $0xd8] sm:$0x1] %vm1410_vm10, %v3838_v3  ;;  %v4191_v58 = vld [vmem:[#allocation2 + $0x50] sm:$0xff]  ;;  %v4114_v53 = vrot.slane %v4100_v14, %v5906_v44  ;;  %v4058_v63 = vrot.slane %v4040_v20, %v5906_v44  ;;  %v4193_v2 = vld [vmem:[#allocation2 + $0x60] sm:$0xff] }
 0x21f   :  { %4234 = vst.msk [vmem:[%s6321_s5 + $0xa0] sm:$0xff] %vm101_vm7, %v4201_v43  ;;  %4222 = vst.msk [vmem:[%s6321_s5 + $0x40] sm:$0xff] %vm101_vm7, %v4189_v45  ;;  %v4211_v0 = vld [vmem:[#allocation2 + $0xf0] sm:$0xff]  ;;  %v4115_v4 = vcombine.high %v4107_v29, %v4107_v29  ;;  %v4123_v61 = vrot.slane %v4107_v29, %v5906_v44  ;;  %v4065_v5 = vrot.slane %v4051_v30, %v5906_v44 }
 0x220   :  { %3873 = vst.msk [vmem:[#allocation2 + $0xe8] sm:$0x1] %vm1410_vm10, %v3840_v46  ;;  %3860 = vst.msk [vmem:[#allocation2 + $0x18] sm:$0x1] %vm1410_vm10, %v3782_v51  ;;  %v4187_v1 = vld [vmem:[#allocation2 + $0x30] sm:$0xff]  ;;  %v4116_v6 = vcombine.high %v4114_v53, %v4114_v53  ;;  %v4130_v9 = vrot.slane %v4114_v53, %v5906_v44  ;;  %v4066_v59 = vcombine.high %v4058_v63, %v4058_v63 }
 0x221   :  { %3861 = vst.msk [vmem:[#allocation2 + $0x28] sm:$0x1] %vm1410_vm10, %v3790_v12  ;;  %3870 = vst.msk [vmem:[#allocation2 + $0xb8] sm:$0x1] %vm1410_vm10, %v3841_v11  ;;  %v4195_v62 = vld [vmem:[#allocation2 + $0x70] sm:$0xff]  ;;  %v4074_v60 = vrot.slane %v4058_v63, %v5906_v44  ;;  %v4137_v22 = vrot.slane %v4115_v4, %v5906_v44  ;;  %v4145_v23 = vcombine.high %v4123_v61, %v4123_v61 }
 0x222   :  { %4240 = vst.msk [vmem:[%s6321_s5 + $0xd0] sm:$0xff] %vm101_vm7, %v4207_v15  ;;  %4242 = vst.msk [vmem:[%s6321_s5 + $0xe0] sm:$0xff] %vm101_vm7, %v4209_v21  ;;  %v4067_v36 = vcombine.high %v4065_v5, %v4065_v5  ;;  %v4081_v27 = vrot.slane %v4065_v5, %v5906_v44  ;;  %v4144_v28 = vrot.slane %v4116_v6, %v5906_v44 }
 0x223   :  { %4216 = vst.msk [vmem:[%s6321_s5 + $0x10] sm:$0xff] %vm101_vm7, %v4183_v24  ;;  %4236 = vst.msk [vmem:[%s6321_s5 + $0xb0] sm:$0xff] %vm101_vm7, %v4203_v52  ;;  %v4146_v31 = vcombine.high %v4130_v9, %v4130_v9  ;;  %v4088_v32 = vrot.slane %v4066_v59, %v5906_v44  ;;  %v4096_v33 = vcombine.high %v4074_v60, %v4074_v60 }
 0x224   :  { %3864 = vst.msk [vmem:[#allocation2 + $0x58] sm:$0x1] %vm1410_vm10, %v3789_v13  ;;  %3865 = vst.msk [vmem:[#allocation2 + $0x68] sm:$0x1] %vm1410_vm10, %v3791_v54  ;;  %v4147_v34 = vcombine.high %v4137_v22, %v4137_v22  ;;  %v4095_v35 = vrot.slane %v4067_v36, %v5906_v44  ;;  %v4097_v18 = vcombine.high %v4081_v27, %v4081_v27 }
 0x225   :  { %4218 = vst.msk [vmem:[%s6321_s5 + $0x20] sm:$0xff] %vm101_vm7, %v4185_v57  ;;  %4224 = vst.msk [vmem:[%s6321_s5 + $0x50] sm:$0xff] %vm101_vm7, %v4191_v58  ;;  %v4148_v19 = vcombine.high %v4144_v28, %v4144_v28  ;;  %v4098_v7 = vcombine.high %v4088_v32, %v4088_v32 }
 0x226   :  { %3874 = vst.msk [vmem:[#allocation2 + $0xf8] sm:$0x1] %vm1410_vm10, %v3842_v25  ;;  %3862 = vst.msk [vmem:[#allocation2 + $0x38] sm:$0x1] %vm1410_vm10, %v3792_v26  ;;  %v4099_v47 = vcombine.high %v4095_v35, %v4095_v35 }
 0x227   :  { %4244 = vst.msk [vmem:[%s6321_s5 + $0xf0] sm:$0xff] %vm101_vm7, %v4211_v0  ;;  %4220 = vst.msk [vmem:[%s6321_s5 + $0x30] sm:$0xff] %vm101_vm7, %v4187_v1 }
 0x228   :  { %4226 = vst.msk [vmem:[%s6321_s5 + $0x60] sm:$0xff] %vm101_vm7, %v4193_v2  ;;  %4228 = vst.msk [vmem:[%s6321_s5 + $0x70] sm:$0xff] %vm101_vm7, %v4195_v62 }
 0x229   :  { %3866 = vst.msk [vmem:[#allocation2 + $0x78] sm:$0x1] %vm1410_vm10, %v3793_v56  ;;  %4173 = vst.msk [vmem:[#allocation2 + $0x89] sm:$0x1] %vm1410_vm10, %v4123_v61 }
 0x22a   :  { %4177 = vst.msk [vmem:[#allocation2 + $0xc9] sm:$0x1] %vm1410_vm10, %v4130_v9  ;;  %4165 = vst.msk [vmem:[#allocation2 + $0x9] sm:$0x1] %vm1410_vm10, %v4074_v60 }
 0x22b   :  { %4174 = vst.msk [vmem:[#allocation2 + $0x99] sm:$0x1] %vm1410_vm10, %v4137_v22  ;;  %4175 = vst.msk [vmem:[#allocation2 + $0xa9] sm:$0x1] %vm1410_vm10, %v4145_v23 }
 0x22c   :  { %4169 = vst.msk [vmem:[#allocation2 + $0x49] sm:$0x1] %vm1410_vm10, %v4081_v27  ;;  %4178 = vst.msk [vmem:[#allocation2 + $0xd9] sm:$0x1] %vm1410_vm10, %v4144_v28 }
 0x22d   :  { %4179 = vst.msk [vmem:[#allocation2 + $0xe9] sm:$0x1] %vm1410_vm10, %v4146_v31  ;;  %4166 = vst.msk [vmem:[#allocation2 + $0x19] sm:$0x1] %vm1410_vm10, %v4088_v32 }
 0x22e   :  { %4167 = vst.msk [vmem:[#allocation2 + $0x29] sm:$0x1] %vm1410_vm10, %v4096_v33  ;;  %4176 = vst.msk [vmem:[#allocation2 + $0xb9] sm:$0x1] %vm1410_vm10, %v4147_v34 }
 0x22f   :  { %4170 = vst.msk [vmem:[#allocation2 + $0x59] sm:$0x1] %vm1410_vm10, %v4095_v35  ;;  %4171 = vst.msk [vmem:[#allocation2 + $0x69] sm:$0x1] %vm1410_vm10, %v4097_v18 }
 0x230   :  { %4180 = vst.msk [vmem:[#allocation2 + $0xf9] sm:$0x1] %vm1410_vm10, %v4148_v19  ;;  %4168 = vst.msk [vmem:[#allocation2 + $0x39] sm:$0x1] %vm1410_vm10, %v4098_v7  ;;  %v4198_v44 = vld [vmem:[#allocation2 + $0x88] sm:$0x3] }
 0x231   :  { %4172 = vst.msk [vmem:[#allocation2 + $0x79] sm:$0x1] %vm1410_vm10, %v4099_v47  ;;  %v4206_v40 = vld [vmem:[#allocation2 + $0xc8] sm:$0x3] }
 0x232   :  { %4231 = vst.msk [vmem:[%s6321_s5 + $0x88] sm:$0x3] %vm4214_vm11, %v4198_v44  ;;  %v4182_v48 = vld [vmem:[#allocation2 + $0x8] sm:$0x3]  ;;  %v4200_v55 = vld [vmem:[#allocation2 + $0x98] sm:$0x3] }
 0x233   :  { %v4202_v37 = vld [vmem:[#allocation2 + $0xa8] sm:$0x3]  ;;  %4239 = vst.msk [vmem:[%s6321_s5 + $0xc8] sm:$0x3] %vm4214_vm11, %v4206_v40  ;;  %4215 = vst.msk [vmem:[%s6321_s5 + $0x8] sm:$0x3] %vm4214_vm11, %v4182_v48 }
 0x234   :  { %v4190_v38 = vld [vmem:[#allocation2 + $0x48] sm:$0x3]  ;;  %v4208_v42 = vld [vmem:[#allocation2 + $0xd8] sm:$0x3]  ;;  %4233 = vst.msk [vmem:[%s6321_s5 + $0x98] sm:$0x3] %vm4214_vm11, %v4200_v55 }
 0x235   :  { %v4210_v16 = vld [vmem:[#allocation2 + $0xe8] sm:$0x3]  ;;  %4235 = vst.msk [vmem:[%s6321_s5 + $0xa8] sm:$0x3] %vm4214_vm11, %v4202_v37  ;;  %v4184_v17 = vld [vmem:[#allocation2 + $0x18] sm:$0x3] }
 0x236   :  { %4223 = vst.msk [vmem:[%s6321_s5 + $0x48] sm:$0x3] %vm4214_vm11, %v4190_v38  ;;  %v4204_v49 = vld [vmem:[#allocation2 + $0xb8] sm:$0x3]  ;;  %4241 = vst.msk [vmem:[%s6321_s5 + $0xd8] sm:$0x3] %vm4214_vm11, %v4208_v42 }
 0x237   :  { %4243 = vst.msk [vmem:[%s6321_s5 + $0xe8] sm:$0x3] %vm4214_vm11, %v4210_v16  ;;  %v4186_v50 = vld [vmem:[#allocation2 + $0x28] sm:$0x3]  ;;  %v4192_v10 = vld [vmem:[#allocation2 + $0x58] sm:$0x3] }
 0x238   :  { %4217 = vst.msk [vmem:[%s6321_s5 + $0x18] sm:$0x3] %vm4214_vm11, %v4184_v17  ;;  %v4212_v8 = vld [vmem:[#allocation2 + $0xf8] sm:$0x3]  ;;  %4237 = vst.msk [vmem:[%s6321_s5 + $0xb8] sm:$0x3] %vm4214_vm11, %v4204_v49 }
 0x239   :  { %v4188_v3 = vld [vmem:[#allocation2 + $0x38] sm:$0x3]  ;;  %v4194_v46 = vld [vmem:[#allocation2 + $0x68] sm:$0x3]  ;;  %4219 = vst.msk [vmem:[%s6321_s5 + $0x28] sm:$0x3] %vm4214_vm11, %v4186_v50 }
 0x23a   :  { %4225 = vst.msk [vmem:[%s6321_s5 + $0x58] sm:$0x3] %vm4214_vm11, %v4192_v10  ;;  %4245 = vst.msk [vmem:[%s6321_s5 + $0xf8] sm:$0x3] %vm4214_vm11, %v4212_v8  ;;  %v4196_v51 = vld [vmem:[#allocation2 + $0x78] sm:$0x3] }
 0x23b   :  { %4221 = vst.msk [vmem:[%s6321_s5 + $0x38] sm:$0x3] %vm4214_vm11, %v4188_v3  ;;  %4227 = vst.msk [vmem:[%s6321_s5 + $0x68] sm:$0x3] %vm4214_vm11, %v4194_v46 }
 0x23c   :  { %4229 = vst.msk [vmem:[%s6321_s5 + $0x78] sm:$0x3] %vm4214_vm11, %v4196_v51 }

</bundles_post_ra>
